<compile_context>
chip_gen: v6e
topology: v6e:2x2x1
jax: 0.10.0
libtpu: 0.0.40
codegen_flags: <defaults>
</compile_context>

<pallas_src>
import functools

import jax
import jax.numpy as jnp
from jax.experimental import pallas as pl
from jax.experimental.pallas import tpu as pltpu

BN_EPS = 1e-5

# Weight N-tile: (4096 x 1024) bf16 = 8 MiB per buffer -> 16 MiB double-buffered; fits
# v7x's 64 MiB VMEM with headroom and is comfortably under v5e/v6e's 128 MiB.
DEFAULT_TILE_N = 1024
# Above the default scoped VMEM limits (16/32 MiB) but below v7x's 64 MiB physical VMEM.
VMEM_LIMIT_BYTES = 48 * 1024 * 1024


# ---------------------------------------------------------------------------
# Kernel 1: masked self-attention + fused mean-pool (one view per grid step)
# ---------------------------------------------------------------------------
def _attention_pool_kernel(x_ref, mask_ref, o_ref):
    # x block: (1, B, S, D) f32; mask block: (B, S) with 1 = valid key, 0 = padding.
    x = x_ref[0]                                   # (B, S, D) f32
    d = x.shape[-1]
    scale = 1.0 / (d ** 0.5)
    # Fold the softmax scale into the bf16 cast of Q (no f32 pass over (B,Sq,Sk) scores);
    # MXU inputs are native bf16, accumulation stays f32.
    q = (x * scale).astype(jnp.bfloat16)
    k = x.astype(jnp.bfloat16)
    # Batched Q.K^T without an explicit transpose of K (contract last dims).
    scores = jax.lax.dot_general(
        q, k,
        dimension_numbers=(((2,), (2,)), ((0,), (0,))),
        preferred_element_type=jnp.float32)                 # (B, Sq, Sk) f32
    valid = mask_ref[...] > 0.0                             # (B, Sk)
    scores = jnp.where(valid[:, None, :], scores, -1e9)
    scores = scores - jnp.max(scores, axis=-1, keepdims=True)
    p = jnp.exp(scores)
    p = p * pl.reciprocal(jnp.sum(p, axis=-1, keepdims=True), approx=True)
    attn = jax.lax.dot_general(
        p.astype(jnp.bfloat16), k,
        dimension_numbers=(((2,), (1,)), ((0,), (0,))),
        preferred_element_type=jnp.float32)                 # (B, Sq, D) f32
    # TODO(synk): backbone (TextCNN / BERT encoder) is an external module not defined in the
    # source; stand-in is mean pooling over the sequence axis, fused here to avoid an extra
    # (B, S, D) HBM round trip.  Pooling averages over all query positions (mask only gates keys).
    o_ref[0] = jnp.mean(attn, axis=1).astype(o_ref.dtype)


def attention_pool(x_views, mask):
    """x_views: (2, B, S, D) float32, mask: (B, S) with 1 = valid key, 0 = padding.
    Returns (2, B, D) bf16 pooled features (downstream MLPs consume bf16 activations)."""
    V, B, S, D = x_views.shape
    return pl.pallas_call(
        _attention_pool_kernel,
        out_shape=jax.ShapeDtypeStruct((V, B, D), jnp.bfloat16),
        grid=(V,),
        in_specs=[
            pl.BlockSpec((1, B, S, D), lambda v: (v, 0, 0, 0)),
            pl.BlockSpec((B, S), lambda v: (0, 0)),   # mask stays resident across views
        ],
        out_specs=pl.BlockSpec((1, B, D), lambda v: (v, 0, 0)),
        compiler_params=pltpu.CompilerParams(dimension_semantics=("parallel",)),
    )(x_views, mask)


# ---------------------------------------------------------------------------
# Kernel 2: fused Linear -> BatchNorm1d(per-view batch stats) -> (optional) ReLU
#           Both views share the matmul M dimension: x is (2B, Din), grid=(n_tiles,).
#           Each (Din, TN) weight tile is DMA'd and MXU-pushed exactly once.
# ---------------------------------------------------------------------------
def _linear_bn_kernel(x_ref, w_ref, g_ref, beta_ref, o_ref, *, relu, rows_per_view,
                      num_views):
    # x block: (V*B, Din) bf16/f32; w block: (Din, TN) bf16; g/beta: (1, TN); out: (V*B, TN)
    x = x_ref[...].astype(jnp.bfloat16)
    y = jnp.dot(x, w_ref[...], preferred_element_type=jnp.float32)   # (V*B, TN) f32
    g = g_ref[...]
    beta = beta_ref[...]
    # Linear bias is omitted: it is exactly cancelled by the BN mean subtraction below.
    # BN statistics are computed PER VIEW (matching two separate PyTorch forward passes).
    for v in range(num_views):
        lo, hi = v * rows_per_view, (v + 1) * rows_per_view
        yv = y[lo:hi]
        mean = jnp.mean(yv, axis=0, keepdims=True)
        var = jnp.mean(jnp.square(yv - mean), axis=0, keepdims=True)  # biased var (torch BN train)
        out = (yv - mean) * jax.lax.rsqrt(var + BN_EPS) * g + beta
        if relu:
            out = jnp.maximum(out, 0.0)
        o_ref[lo:hi, :] = out.astype(o_ref.dtype)


def _linear_kernel(x_ref, w_ref, b_ref, o_ref):
    # Plain Linear (with bias), used for the predictor's final (un-BN'd) layer.
    x = x_ref[...].astype(jnp.bfloat16)
    y = jnp.dot(x, w_ref[...], preferred_element_type=jnp.float32) + b_ref[...]
    o_ref[...] = y.astype(o_ref.dtype)


def _pick_tile_n(dout, tile_n):
    """Largest 128-multiple divisor of dout that is <= tile_n (never a silent full block)."""
    if dout <= tile_n:
        return dout
    best = None
    t = 128
    while t <= tile_n:
        if dout % t == 0:
            best = t
        t += 128
    return best if best is not None else dout


def _mlp_compiler_params():
    # Single grid axis = output-feature tiles -> megacore / 2-TC split lands on the
    # feature axis (each weight tile read from HBM exactly once).
    return pltpu.CompilerParams(
        dimension_semantics=("parallel",),
        vmem_limit_bytes=VMEM_LIMIT_BYTES,
    )


def _mlp_cost(m, din, dout, x_bytes):
    return pl.CostEstimate(
        flops=2 * m * din * dout,
        transcendentals=0,
        bytes_accessed=din * dout * 2 + m * din * x_bytes + m * dout * 4 + 2 * dout * 4,
    )


def linear_bn_fused(x, w, gamma, beta, *, relu, rows_per_view,
                    out_dtype=jnp.bfloat16, tile_n=DEFAULT_TILE_N):
    """x: (V*B, Din); w: (Din, Dout) bf16 (pre-cast); gamma/beta: (1, Dout) f32.
    BN statistics are computed per contiguous block of `rows_per_view` rows."""
    m, din = x.shape
    dout = w.shape[1]
    num_views = m // rows_per_view
    tn = _pick_tile_n(dout, tile_n)
    nt = dout // tn
    return pl.pallas_call(
        functools.partial(_linear_bn_kernel, relu=relu, rows_per_view=rows_per_view,
                          num_views=num_views),
        out_shape=jax.ShapeDtypeStruct((m, dout), out_dtype),
        grid=(nt,),
        in_specs=[
            pl.BlockSpec((m, din), lambda n: (0, 0)),      # activations resident across tiles
            pl.BlockSpec((din, tn), lambda n: (0, n)),     # weight tile streams (double-buffered)
            pl.BlockSpec((1, tn), lambda n: (0, n)),
            pl.BlockSpec((1, tn), lambda n: (0, n)),
        ],
        out_specs=pl.BlockSpec((m, tn), lambda n: (0, n)),
        compiler_params=_mlp_compiler_params(),
        cost_estimate=_mlp_cost(m, din, dout, x.dtype.itemsize),
    )(x, w, gamma, beta)


def linear_fused(x, w, b, *, out_dtype=jnp.float32, tile_n=DEFAULT_TILE_N):
    m, din = x.shape
    dout = w.shape[1]
    tn = _pick_tile_n(dout, tile_n)
    nt = dout // tn
    return pl.pallas_call(
        _linear_kernel,
        out_shape=jax.ShapeDtypeStruct((m, dout), out_dtype),
        grid=(nt,),
        in_specs=[
            pl.BlockSpec((m, din), lambda n: (0, 0)),
            pl.BlockSpec((din, tn), lambda n: (0, n)),
            pl.BlockSpec((1, tn), lambda n: (0, n)),
        ],
        out_specs=pl.BlockSpec((m, tn), lambda n: (0, n)),
        compiler_params=_mlp_compiler_params(),
        cost_estimate=_mlp_cost(m, din, dout, x.dtype.itemsize),
    )(x, w, b)


# ---------------------------------------------------------------------------
# Module composition (glue)
# ---------------------------------------------------------------------------
def projection_mlp(x, layers, rows_per_view):
    l1, l2, l3 = layers
    x = linear_bn_fused(x, l1["w"], l1["g"], l1["be"], relu=True, rows_per_view=rows_per_view)
    x = linear_bn_fused(x, l2["w"], l2["g"], l2["be"], relu=True, rows_per_view=rows_per_view)
    # z is user-facing -> keep f32.
    x = linear_bn_fused(x, l3["w"], l3["g"], l3["be"], relu=False, rows_per_view=rows_per_view,
                        out_dtype=jnp.float32)
    return x


def prediction_mlp(x, p, rows_per_view):
    l1 = p["l1"]
    x = linear_bn_fused(x, l1["w"], l1["g"], l1["be"], relu=True, rows_per_view=rows_per_view)
    x = linear_fused(x, p["w2"], p["b2"], out_dtype=jnp.float32)
    return x


def plus_proj_forward(params, x1, x2, mask):
    B = x1.shape[0]
    x = jnp.stack([x1, x2], axis=0)            # (2, B, S, D) — both views share kernels/weights
    h = attention_pool(x, mask)                # (2, B, D_model) bf16  attention + backbone stand-in
    h = h.reshape(2 * B, -1)                   # views fused into matmul M dimension
    z = projection_mlp(h, params["proj"], B)   # (2B, D_z) f32
    p = prediction_mlp(z, params["pred"], B)   # (2B, D_z) f32
    z1, z2 = z[:B], z[B:]
    p1, p2 = p[:B], p[B:]
    # (p1, z2, p2, z1) to match the PyTorch forward's return order
    return p1, z2, p2, z1


# ---------------------------------------------------------------------------
# Deterministic parameter init (torch-Linear-style uniform) + one-time kernel prep
# ---------------------------------------------------------------------------
def _init_linear(key, din, dout):
    kw, kb = jax.random.split(key)
    bound = 1.0 / (din ** 0.5)
    w = jax.random.uniform(kw, (din, dout), jnp.float32, -bound, bound)
    b = jax.random.uniform(kb, (dout,), jnp.float32, -bound, bound)
    return w, b


def init_params(key, d_model, hid_proj, d_z, hid_pred):
    keys = jax.random.split(key, 5)
    proj = {}
    for i, (din, dout, k) in enumerate(
        [(d_model, hid_proj, keys[0]), (hid_proj, hid_proj, keys[1]), (hid_proj, d_z, keys[2])],
        start=1,
    ):
        w, b = _init_linear(k, din, dout)
        # Linear biases of BN-followed layers are kept for parameter fidelity but are a
        # mathematical no-op (cancelled by BN mean subtraction) and are not fed to the kernel.
        proj[f"w{i}"], proj[f"b{i}"] = w, b
        proj[f"g{i}"] = jnp.ones((dout,), jnp.float32)
        proj[f"be{i}"] = jnp.zeros((dout,), jnp.float32)
    pred = {}
    w, b = _init_linear(keys[3], d_z, hid_pred)
    pred["w1"], pred["b1"] = w, b
    pred["g1"] = jnp.ones((hid_pred,), jnp.float32)
    pred["be1"] = jnp.zeros((hid_pred,), jnp.float32)
    w, b = _init_linear(keys[4], hid_pred, d_z)
    pred["w2"], pred["b2"] = w, b
    return {"proj": proj, "pred": pred}


def prepare_params(params):
    """One-time, outside-jit prep: cast MLP weights to bf16 and pre-reshape BN/bias vectors,
    so no per-forward f32->bf16 HBM pass remains (weights dominate HBM traffic at small B)."""
    proj, pred = params["proj"], params["pred"]

    def lbn(w, g, be):
        return {"w": w.astype(jnp.bfloat16),
                "g": g.reshape(1, -1).astype(jnp.float32),
                "be": be.reshape(1, -1).astype(jnp.float32)}

    return {
        "proj": (lbn(proj["w1"], proj["g1"], proj["be1"]),
                 lbn(proj["w2"], proj["g2"], proj["be2"]),
                 lbn(proj["w3"], proj["g3"], proj["be3"])),
        "pred": {
            "l1": lbn(pred["w1"], pred["g1"], pred["be1"]),
            "w2": pred["w2"].astype(jnp.bfloat16),
            "b2": pred["b2"].reshape(1, -1).astype(jnp.float32),
        },
    }


if __name__ == "__main__":
    # Small lane-dense stand-ins for the real shapes (model_dim -> 4096 -> 4096,
    # predictor 4096 -> 1024 -> 4096): every feature dim is a multiple of 128.
    B, S, D_MODEL = 8, 8, 128
    HID_PROJ, D_Z, HID_PRED = 128, 128, 128

    key = jax.random.PRNGKey(0)
    k1, k2, kp = jax.random.split(key, 3)
    x1 = jax.random.normal(k1, (B, S, D_MODEL), jnp.float32)
    x2 = jax.random.normal(k2, (B, S, D_MODEL), jnp.float32)
    mask = jnp.ones((B, S), jnp.float32).at[0, -3:].set(0.0)   # pad tail of sample 0

    params = prepare_params(init_params(kp, D_MODEL, HID_PROJ, D_Z, HID_PRED))

    p1, z2, p2, z1 = jax.jit(plus_proj_forward)(params, x1, x2, mask)
    jax.block_until_ready((p1, z2, p2, z1))

    assert p1.shape == (B, D_Z) and p2.shape == (B, D_Z)
    assert z1.shape == (B, D_Z) and z2.shape == (B, D_Z)
    assert all(bool(jnp.all(jnp.isfinite(t))) for t in (p1, z2, p2, z1))
    print("KERNEL_OK")
</pallas_src>

<mosaic_0001>
module attributes {stable_mosaic.version = 11 : i64} {
  func.func @_attention_pool_kernel(%arg0: i32, %arg1: memref<1x8x8x128xf32, #tpu.memory_space<vmem>>, %arg2: memref<8x8xf32, #tpu.memory_space<vmem>>, %arg3: memref<1x8x128xbf16, #tpu.memory_space<vmem>>) attributes {dimension_semantics = [#tpu.dimension_semantics<parallel>], iteration_bounds = array<i64: 2>, scalar_prefetch = 0 : i64, scratch_operands = 0 : i64, tpu.core_type = #tpu.core_type<tc>, window_params = [{transform_indices = @transform_0, window_bounds = array<i64: 1, 8, 8, 128>}, {pipeline_mode = #tpu.pipeline_mode<synchronous>, transform_indices = @transform_1, window_bounds = array<i64: 8, 8>}, {transform_indices = @transform_2, window_bounds = array<i64: 1, 8, 128>}]} {
    %c0 = arith.constant 0 : index
    %c0_0 = arith.constant 0 : index
    %c0_1 = arith.constant 0 : index
    %c0_2 = arith.constant 0 : index
    %0 = vector.load %arg1[%c0, %c0_0, %c0_1, %c0_2] : memref<1x8x8x128xf32, #tpu.memory_space<vmem>>, vector<1x8x8x128xf32>
    %1 = vector.shape_cast %0 : vector<1x8x8x128xf32> to vector<8x8x128xf32>
    %cst = arith.constant 0.0883883461 : f32
    %2 = vector.broadcast %cst : f32 to vector<8x8x128xf32>
    %3 = arith.mulf %1, %2 : vector<8x8x128xf32>
    %4 = arith.truncf %3 : vector<8x8x128xf32> to vector<8x8x128xbf16>
    %5 = arith.truncf %1 : vector<8x8x128xf32> to vector<8x8x128xbf16>
    %cst_3 = arith.constant dense<0.000000e+00> : vector<8x8x8xf32>
    %6 = tpu.matmul %4, %5, %cst_3 {dimension_numbers = #tpu.dot_dimension_numbers<[2], [2], [1], [1], [0, 0, 0, 1, 1, 1], [0], [0]>} : vector<8x8x128xbf16>, vector<8x8x128xbf16>, vector<8x8x8xf32> -> vector<8x8x8xf32>
    %c0_4 = arith.constant 0 : index
    %c0_5 = arith.constant 0 : index
    %7 = vector.load %arg2[%c0_4, %c0_5] : memref<8x8xf32, #tpu.memory_space<vmem>>, vector<8x8xf32>
    %cst_6 = arith.constant 0.000000e+00 : f32
    %8 = vector.broadcast %cst_6 : f32 to vector<8x8xf32>
    %9 = arith.cmpf ogt, %7, %8 : vector<8x8xf32>
    %10 = vector.shape_cast %9 : vector<8x8xi1> to vector<8x1x8xi1>
    %cst_7 = arith.constant -1.000000e+09 : f32
    %11 = vector.shape_cast %10 : vector<8x1x8xi1> to vector<8x1x8xi1>
    %12 = vector.broadcast %11 : vector<8x1x8xi1> to vector<8x8x8xi1>
    %13 = vector.broadcast %cst_7 : f32 to vector<8x8x8xf32>
    %14 = arith.select %12, %6, %13 : vector<8x8x8xi1>, vector<8x8x8xf32>
    %cst_8 = arith.constant dense<0xFF800000> : vector<8x8xf32>
    %15 = vector.multi_reduction <maximumf>, %14, %cst_8 [2] : vector<8x8x8xf32> to vector<8x8xf32>
    %16 = vector.shape_cast %15 : vector<8x8xf32> to vector<8x8x1xf32>
    %17 = vector.broadcast %16 : vector<8x8x1xf32> to vector<8x8x8xf32>
    %18 = arith.subf %14, %17 : vector<8x8x8xf32>
    %19 = math.exp %18 : vector<8x8x8xf32>
    %cst_9 = arith.constant dense<0.000000e+00> : vector<8x8xf32>
    %20 = vector.multi_reduction <add>, %19, %cst_9 [2] : vector<8x8x8xf32> to vector<8x8xf32>
    %21 = vector.shape_cast %20 : vector<8x8xf32> to vector<8x8x1xf32>
    %22 = tpu.reciprocal %21 {approx = true} : vector<8x8x1xf32> -> vector<8x8x1xf32>
    %23 = vector.broadcast %22 : vector<8x8x1xf32> to vector<8x8x8xf32>
    %24 = arith.mulf %19, %23 : vector<8x8x8xf32>
    %25 = arith.truncf %24 : vector<8x8x8xf32> to vector<8x8x8xbf16>
    %cst_10 = arith.constant dense<0.000000e+00> : vector<8x8x128xf32>
    %26 = tpu.matmul %25, %5, %cst_10 {dimension_numbers = #tpu.dot_dimension_numbers<[2], [1], [1], [2], [0, 0, 0, 1, 1, 2], [0], [0]>} : vector<8x8x8xbf16>, vector<8x8x128xbf16>, vector<8x8x128xf32> -> vector<8x8x128xf32>
    %cst_11 = arith.constant dense<0.000000e+00> : vector<8x128xf32>
    %27 = vector.multi_reduction <add>, %26, %cst_11 [1] : vector<8x8x128xf32> to vector<8x128xf32>
    %cst_12 = arith.constant 8.000000e+00 : f32
    %28 = vector.broadcast %cst_12 : f32 to vector<8x128xf32>
    %29 = arith.divf %27, %28 : vector<8x128xf32>
    %30 = arith.truncf %29 : vector<8x128xf32> to vector<8x128xbf16>
    %c0_13 = arith.constant 0 : index
    %c0_14 = arith.constant 0 : index
    %c0_15 = arith.constant 0 : index
    %31 = vector.load %arg3[%c0_13, %c0_14, %c0_15] : memref<1x8x128xbf16, #tpu.memory_space<vmem>>, vector<1x8x128xbf16>
    %32 = vector.shape_cast %31 : vector<1x8x128xbf16> to vector<8x128xbf16>
    %33 = vector.shape_cast %30 : vector<8x128xbf16> to vector<1x8x128xbf16>
    tpu.vector_store %arg3[%c0_13, %c0_14, %c0_15], %33 {strides = array<i32>} : memref<1x8x128xbf16, #tpu.memory_space<vmem>>, vector<1x8x128xbf16>,
    return
  }
  func.func @transform_0(%arg0: i32) -> (i32, i32, i32, i32) {
    %c0_i32 = arith.constant 0 : i32
    %c0_i32_0 = arith.constant 0 : i32
    %c0_i32_1 = arith.constant 0 : i32
    %c0_i32_2 = arith.constant 0 : i32
    return %arg0, %c0_i32, %c0_i32_0, %c0_i32_1 : i32, i32, i32, i32
  }
  func.func @transform_1(%arg0: i32) -> (i32, i32) {
    %c0_i32 = arith.constant 0 : i32
    %c0_i32_0 = arith.constant 0 : i32
    %c0_i32_1 = arith.constant 0 : i32
    return %c0_i32, %c0_i32_0 : i32, i32
  }
  func.func @transform_2(%arg0: i32) -> (i32, i32, i32) {
    %c0_i32 = arith.constant 0 : i32
    %c0_i32_0 = arith.constant 0 : i32
    %c0_i32_1 = arith.constant 0 : i32
    return %arg0, %c0_i32, %c0_i32_0 : i32, i32, i32
  }
}

module attributes {stable_mosaic.version = 11 : i64} {
  func.func @_linear_bn_kernel(%arg0: i32, %arg1: memref<16x128xbf16, #tpu.memory_space<vmem>>, %arg2: memref<128x128xbf16, #tpu.memory_space<vmem>>, %arg3: memref<1x128xf32, #tpu.memory_space<vmem>>, %arg4: memref<1x128xf32, #tpu.memory_space<vmem>>, %arg5: memref<16x128xbf16, #tpu.memory_space<vmem>>) attributes {dimension_semantics = [#tpu.dimension_semantics<parallel>], iteration_bounds = array<i64: 1>, scalar_prefetch = 0 : i64, scratch_operands = 0 : i64, tpu.core_type = #tpu.core_type<tc>, window_params = [{pipeline_mode = #tpu.pipeline_mode<synchronous>, transform_indices = @transform_0, window_bounds = array<i64: 16, 128>}, {transform_indices = @transform_1, window_bounds = array<i64: 128, 128>}, {transform_indices = @transform_2, window_bounds = array<i64: 1, 128>}, {transform_indices = @transform_3, window_bounds = array<i64: 1, 128>}, {transform_indices = @transform_4, window_bounds = array<i64: 16, 128>}]} {
    %c0 = arith.constant 0 : index
    %c0_0 = arith.constant 0 : index
    %0 = vector.load %arg1[%c0, %c0_0] : memref<16x128xbf16, #tpu.memory_space<vmem>>, vector<16x128xbf16>
    %c0_1 = arith.constant 0 : index
    %c0_2 = arith.constant 0 : index
    %1 = vector.load %arg2[%c0_1, %c0_2] : memref<128x128xbf16, #tpu.memory_space<vmem>>, vector<128x128xbf16>
    %cst = arith.constant dense<0.000000e+00> : vector<16x128xf32>
    %2 = tpu.matmul %0, %1, %cst {dimension_numbers = #tpu.dot_dimension_numbers<[1], [0], [0], [1], [0, 0, 1, 1], [], []>} : vector<16x128xbf16>, vector<128x128xbf16>, vector<16x128xf32> -> vector<16x128xf32>
    %c0_3 = arith.constant 0 : index
    %c0_4 = arith.constant 0 : index
    %3 = vector.load %arg3[%c0_3, %c0_4] : memref<1x128xf32, #tpu.memory_space<vmem>>, vector<1x128xf32>
    %c0_5 = arith.constant 0 : index
    %c0_6 = arith.constant 0 : index
    %4 = vector.load %arg4[%c0_5, %c0_6] : memref<1x128xf32, #tpu.memory_space<vmem>>, vector<1x128xf32>
    %5 = vector.extract_strided_slice %2 {offsets = [0, 0], sizes = [8, 128], strides = [1, 1]} : vector<16x128xf32> to vector<8x128xf32>
    %cst_7 = arith.constant dense<0.000000e+00> : vector<128xf32>
    %6 = vector.multi_reduction <add>, %5, %cst_7 [0] : vector<8x128xf32> to vector<128xf32>
    %7 = vector.shape_cast %6 : vector<128xf32> to vector<1x128xf32>
    %cst_8 = arith.constant 8.000000e+00 : f32
    %8 = vector.broadcast %cst_8 : f32 to vector<1x128xf32>
    %9 = arith.divf %7, %8 : vector<1x128xf32>
    %10 = vector.broadcast %9 : vector<1x128xf32> to vector<8x128xf32>
    %11 = arith.subf %5, %10 : vector<8x128xf32>
    %12 = arith.mulf %11, %11 : vector<8x128xf32>
    %cst_9 = arith.constant dense<0.000000e+00> : vector<128xf32>
    %13 = vector.multi_reduction <add>, %12, %cst_9 [0] : vector<8x128xf32> to vector<128xf32>
    %14 = vector.shape_cast %13 : vector<128xf32> to vector<1x128xf32>
    %cst_10 = arith.constant 8.000000e+00 : f32
    %15 = vector.broadcast %cst_10 : f32 to vector<1x128xf32>
    %16 = arith.divf %14, %15 : vector<1x128xf32>
    %17 = vector.broadcast %9 : vector<1x128xf32> to vector<8x128xf32>
    %18 = arith.subf %5, %17 : vector<8x128xf32>
    %cst_11 = arith.constant 9.99999974E-6 : f32
    %19 = vector.broadcast %cst_11 : f32 to vector<1x128xf32>
    %20 = arith.addf %16, %19 : vector<1x128xf32>
    %21 = math.rsqrt %20 : vector<1x128xf32>
    %22 = vector.broadcast %21 : vector<1x128xf32> to vector<8x128xf32>
    %23 = arith.mulf %18, %22 : vector<8x128xf32>
    %24 = vector.broadcast %3 : vector<1x128xf32> to vector<8x128xf32>
    %25 = arith.mulf %23, %24 : vector<8x128xf32>
    %26 = vector.broadcast %4 : vector<1x128xf32> to vector<8x128xf32>
    %27 = arith.addf %25, %26 : vector<8x128xf32>
    %cst_12 = arith.constant 0.000000e+00 : f32
    %28 = vector.broadcast %cst_12 : f32 to vector<8x128xf32>
    %29 = arith.maximumf %27, %28 : vector<8x128xf32>
    %30 = arith.truncf %29 : vector<8x128xf32> to vector<8x128xbf16>
    %c0_13 = arith.constant 0 : index
    %c0_14 = arith.constant 0 : index
    %31 = vector.load %arg5[%c0_13, %c0_14] : memref<16x128xbf16, #tpu.memory_space<vmem>>, vector<8x128xbf16>
    tpu.vector_store %arg5[%c0_13, %c0_14], %30 {strides = array<i32>} : memref<16x128xbf16, #tpu.memory_space<vmem>>, vector<8x128xbf16>,
    %32 = vector.extract_strided_slice %2 {offsets = [8, 0], sizes = [8, 128], strides = [1, 1]} : vector<16x128xf32> to vector<8x128xf32>
    %cst_15 = arith.constant dense<0.000000e+00> : vector<128xf32>
    %33 = vector.multi_reduction <add>, %32, %cst_15 [0] : vector<8x128xf32> to vector<128xf32>
    %34 = vector.shape_cast %33 : vector<128xf32> to vector<1x128xf32>
    %cst_16 = arith.constant 8.000000e+00 : f32
    %35 = vector.broadcast %cst_16 : f32 to vector<1x128xf32>
    %36 = arith.divf %34, %35 : vector<1x128xf32>
    %37 = vector.broadcast %36 : vector<1x128xf32> to vector<8x128xf32>
    %38 = arith.subf %32, %37 : vector<8x128xf32>
    %39 = arith.mulf %38, %38 : vector<8x128xf32>
    %cst_17 = arith.constant dense<0.000000e+00> : vector<128xf32>
    %40 = vector.multi_reduction <add>, %39, %cst_17 [0] : vector<8x128xf32> to vector<128xf32>
    %41 = vector.shape_cast %40 : vector<128xf32> to vector<1x128xf32>
    %cst_18 = arith.constant 8.000000e+00 : f32
    %42 = vector.broadcast %cst_18 : f32 to vector<1x128xf32>
    %43 = arith.divf %41, %42 : vector<1x128xf32>
    %44 = vector.broadcast %36 : vector<1x128xf32> to vector<8x128xf32>
    %45 = arith.subf %32, %44 : vector<8x128xf32>
    %cst_19 = arith.constant 9.99999974E-6 : f32
    %46 = vector.broadcast %cst_19 : f32 to vector<1x128xf32>
    %47 = arith.addf %43, %46 : vector<1x128xf32>
    %48 = math.rsqrt %47 : vector<1x128xf32>
    %49 = vector.broadcast %48 : vector<1x128xf32> to vector<8x128xf32>
    %50 = arith.mulf %45, %49 : vector<8x128xf32>
    %51 = vector.broadcast %3 : vector<1x128xf32> to vector<8x128xf32>
    %52 = arith.mulf %50, %51 : vector<8x128xf32>
    %53 = vector.broadcast %4 : vector<1x128xf32> to vector<8x128xf32>
    %54 = arith.addf %52, %53 : vector<8x128xf32>
    %cst_20 = arith.constant 0.000000e+00 : f32
    %55 = vector.broadcast %cst_20 : f32 to vector<8x128xf32>
    %56 = arith.maximumf %54, %55 : vector<8x128xf32>
    %57 = arith.truncf %56 : vector<8x128xf32> to vector<8x128xbf16>
    %c8 = arith.constant 8 : index
    %c0_21 = arith.constant 0 : index
    %58 = vector.load %arg5[%c8, %c0_21] : memref<16x128xbf16, #tpu.memory_space<vmem>>, vector<8x128xbf16>
    tpu.vector_store %arg5[%c8, %c0_21], %57 {strides = array<i32>} : memref<16x128xbf16, #tpu.memory_space<vmem>>, vector<8x128xbf16>,
    return
  }
  func.func @transform_0(%arg0: i32) -> (i32, i32) {
    %c0_i32 = arith.constant 0 : i32
    %c0_i32_0 = arith.constant 0 : i32
    %c0_i32_1 = arith.constant 0 : i32
    return %c0_i32, %c0_i32_0 : i32, i32
  }
  func.func @transform_1(%arg0: i32) -> (i32, i32) {
    %c0_i32 = arith.constant 0 : i32
    %c0_i32_0 = arith.constant 0 : i32
    return %c0_i32, %arg0 : i32, i32
  }
  func.func @transform_2(%arg0: i32) -> (i32, i32) {
    %c0_i32 = arith.constant 0 : i32
    %c0_i32_0 = arith.constant 0 : i32
    return %c0_i32, %arg0 : i32, i32
  }
  func.func @transform_3(%arg0: i32) -> (i32, i32) {
    %c0_i32 = arith.constant 0 : i32
    %c0_i32_0 = arith.constant 0 : i32
    return %c0_i32, %arg0 : i32, i32
  }
  func.func @transform_4(%arg0: i32) -> (i32, i32) {
    %c0_i32 = arith.constant 0 : i32
    %c0_i32_0 = arith.constant 0 : i32
    return %c0_i32, %arg0 : i32, i32
  }
}

module attributes {stable_mosaic.version = 11 : i64} {
  func.func @_linear_bn_kernel(%arg0: i32, %arg1: memref<16x128xbf16, #tpu.memory_space<vmem>>, %arg2: memref<128x128xbf16, #tpu.memory_space<vmem>>, %arg3: memref<1x128xf32, #tpu.memory_space<vmem>>, %arg4: memref<1x128xf32, #tpu.memory_space<vmem>>, %arg5: memref<16x128xf32, #tpu.memory_space<vmem>>) attributes {dimension_semantics = [#tpu.dimension_semantics<parallel>], iteration_bounds = array<i64: 1>, scalar_prefetch = 0 : i64, scratch_operands = 0 : i64, tpu.core_type = #tpu.core_type<tc>, window_params = [{pipeline_mode = #tpu.pipeline_mode<synchronous>, transform_indices = @transform_0, window_bounds = array<i64: 16, 128>}, {transform_indices = @transform_1, window_bounds = array<i64: 128, 128>}, {transform_indices = @transform_2, window_bounds = array<i64: 1, 128>}, {transform_indices = @transform_3, window_bounds = array<i64: 1, 128>}, {transform_indices = @transform_4, window_bounds = array<i64: 16, 128>}]} {
    %c0 = arith.constant 0 : index
    %c0_0 = arith.constant 0 : index
    %0 = vector.load %arg1[%c0, %c0_0] : memref<16x128xbf16, #tpu.memory_space<vmem>>, vector<16x128xbf16>
    %c0_1 = arith.constant 0 : index
    %c0_2 = arith.constant 0 : index
    %1 = vector.load %arg2[%c0_1, %c0_2] : memref<128x128xbf16, #tpu.memory_space<vmem>>, vector<128x128xbf16>
    %cst = arith.constant dense<0.000000e+00> : vector<16x128xf32>
    %2 = tpu.matmul %0, %1, %cst {dimension_numbers = #tpu.dot_dimension_numbers<[1], [0], [0], [1], [0, 0, 1, 1], [], []>} : vector<16x128xbf16>, vector<128x128xbf16>, vector<16x128xf32> -> vector<16x128xf32>
    %c0_3 = arith.constant 0 : index
    %c0_4 = arith.constant 0 : index
    %3 = vector.load %arg3[%c0_3, %c0_4] : memref<1x128xf32, #tpu.memory_space<vmem>>, vector<1x128xf32>
    %c0_5 = arith.constant 0 : index
    %c0_6 = arith.constant 0 : index
    %4 = vector.load %arg4[%c0_5, %c0_6] : memref<1x128xf32, #tpu.memory_space<vmem>>, vector<1x128xf32>
    %5 = vector.extract_strided_slice %2 {offsets = [0, 0], sizes = [8, 128], strides = [1, 1]} : vector<16x128xf32> to vector<8x128xf32>
    %cst_7 = arith.constant dense<0.000000e+00> : vector<128xf32>
    %6 = vector.multi_reduction <add>, %5, %cst_7 [0] : vector<8x128xf32> to vector<128xf32>
    %7 = vector.shape_cast %6 : vector<128xf32> to vector<1x128xf32>
    %cst_8 = arith.constant 8.000000e+00 : f32
    %8 = vector.broadcast %cst_8 : f32 to vector<1x128xf32>
    %9 = arith.divf %7, %8 : vector<1x128xf32>
    %10 = vector.broadcast %9 : vector<1x128xf32> to vector<8x128xf32>
    %11 = arith.subf %5, %10 : vector<8x128xf32>
    %12 = arith.mulf %11, %11 : vector<8x128xf32>
    %cst_9 = arith.constant dense<0.000000e+00> : vector<128xf32>
    %13 = vector.multi_reduction <add>, %12, %cst_9 [0] : vector<8x128xf32> to vector<128xf32>
    %14 = vector.shape_cast %13 : vector<128xf32> to vector<1x128xf32>
    %cst_10 = arith.constant 8.000000e+00 : f32
    %15 = vector.broadcast %cst_10 : f32 to vector<1x128xf32>
    %16 = arith.divf %14, %15 : vector<1x128xf32>
    %17 = vector.broadcast %9 : vector<1x128xf32> to vector<8x128xf32>
    %18 = arith.subf %5, %17 : vector<8x128xf32>
    %cst_11 = arith.constant 9.99999974E-6 : f32
    %19 = vector.broadcast %cst_11 : f32 to vector<1x128xf32>
    %20 = arith.addf %16, %19 : vector<1x128xf32>
    %21 = math.rsqrt %20 : vector<1x128xf32>
    %22 = vector.broadcast %21 : vector<1x128xf32> to vector<8x128xf32>
    %23 = arith.mulf %18, %22 : vector<8x128xf32>
    %24 = vector.broadcast %3 : vector<1x128xf32> to vector<8x128xf32>
    %25 = arith.mulf %23, %24 : vector<8x128xf32>
    %26 = vector.broadcast %4 : vector<1x128xf32> to vector<8x128xf32>
    %27 = arith.addf %25, %26 : vector<8x128xf32>
    %c0_12 = arith.constant 0 : index
    %c0_13 = arith.constant 0 : index
    %28 = vector.load %arg5[%c0_12, %c0_13] : memref<16x128xf32, #tpu.memory_space<vmem>>, vector<8x128xf32>
    tpu.vector_store %arg5[%c0_12, %c0_13], %27 {strides = array<i32>} : memref<16x128xf32, #tpu.memory_space<vmem>>, vector<8x128xf32>,
    %29 = vector.extract_strided_slice %2 {offsets = [8, 0], sizes = [8, 128], strides = [1, 1]} : vector<16x128xf32> to vector<8x128xf32>
    %cst_14 = arith.constant dense<0.000000e+00> : vector<128xf32>
    %30 = vector.multi_reduction <add>, %29, %cst_14 [0] : vector<8x128xf32> to vector<128xf32>
    %31 = vector.shape_cast %30 : vector<128xf32> to vector<1x128xf32>
    %cst_15 = arith.constant 8.000000e+00 : f32
    %32 = vector.broadcast %cst_15 : f32 to vector<1x128xf32>
    %33 = arith.divf %31, %32 : vector<1x128xf32>
    %34 = vector.broadcast %33 : vector<1x128xf32> to vector<8x128xf32>
    %35 = arith.subf %29, %34 : vector<8x128xf32>
    %36 = arith.mulf %35, %35 : vector<8x128xf32>
    %cst_16 = arith.constant dense<0.000000e+00> : vector<128xf32>
    %37 = vector.multi_reduction <add>, %36, %cst_16 [0] : vector<8x128xf32> to vector<128xf32>
    %38 = vector.shape_cast %37 : vector<128xf32> to vector<1x128xf32>
    %cst_17 = arith.constant 8.000000e+00 : f32
    %39 = vector.broadcast %cst_17 : f32 to vector<1x128xf32>
    %40 = arith.divf %38, %39 : vector<1x128xf32>
    %41 = vector.broadcast %33 : vector<1x128xf32> to vector<8x128xf32>
    %42 = arith.subf %29, %41 : vector<8x128xf32>
    %cst_18 = arith.constant 9.99999974E-6 : f32
    %43 = vector.broadcast %cst_18 : f32 to vector<1x128xf32>
    %44 = arith.addf %40, %43 : vector<1x128xf32>
    %45 = math.rsqrt %44 : vector<1x128xf32>
    %46 = vector.broadcast %45 : vector<1x128xf32> to vector<8x128xf32>
    %47 = arith.mulf %42, %46 : vector<8x128xf32>
    %48 = vector.broadcast %3 : vector<1x128xf32> to vector<8x128xf32>
    %49 = arith.mulf %47, %48 : vector<8x128xf32>
    %50 = vector.broadcast %4 : vector<1x128xf32> to vector<8x128xf32>
    %51 = arith.addf %49, %50 : vector<8x128xf32>
    %c8 = arith.constant 8 : index
    %c0_19 = arith.constant 0 : index
    %52 = vector.load %arg5[%c8, %c0_19] : memref<16x128xf32, #tpu.memory_space<vmem>>, vector<8x128xf32>
    tpu.vector_store %arg5[%c8, %c0_19], %51 {strides = array<i32>} : memref<16x128xf32, #tpu.memory_space<vmem>>, vector<8x128xf32>,
    return
  }
  func.func @transform_0(%arg0: i32) -> (i32, i32) {
    %c0_i32 = arith.constant 0 : i32
    %c0_i32_0 = arith.constant 0 : i32
    %c0_i32_1 = arith.constant 0 : i32
    return %c0_i32, %c0_i32_0 : i32, i32
  }
  func.func @transform_1(%arg0: i32) -> (i32, i32) {
    %c0_i32 = arith.constant 0 : i32
    %c0_i32_0 = arith.constant 0 : i32
    return %c0_i32, %arg0 : i32, i32
  }
  func.func @transform_2(%arg0: i32) -> (i32, i32) {
    %c0_i32 = arith.constant 0 : i32
    %c0_i32_0 = arith.constant 0 : i32
    return %c0_i32, %arg0 : i32, i32
  }
  func.func @transform_3(%arg0: i32) -> (i32, i32) {
    %c0_i32 = arith.constant 0 : i32
    %c0_i32_0 = arith.constant 0 : i32
    return %c0_i32, %arg0 : i32, i32
  }
  func.func @transform_4(%arg0: i32) -> (i32, i32) {
    %c0_i32 = arith.constant 0 : i32
    %c0_i32_0 = arith.constant 0 : i32
    return %c0_i32, %arg0 : i32, i32
  }
}

module attributes {stable_mosaic.version = 11 : i64} {
  func.func @_linear_bn_kernel(%arg0: i32, %arg1: memref<16x128xf32, #tpu.memory_space<vmem>>, %arg2: memref<128x128xbf16, #tpu.memory_space<vmem>>, %arg3: memref<1x128xf32, #tpu.memory_space<vmem>>, %arg4: memref<1x128xf32, #tpu.memory_space<vmem>>, %arg5: memref<16x128xbf16, #tpu.memory_space<vmem>>) attributes {dimension_semantics = [#tpu.dimension_semantics<parallel>], iteration_bounds = array<i64: 1>, scalar_prefetch = 0 : i64, scratch_operands = 0 : i64, tpu.core_type = #tpu.core_type<tc>, window_params = [{pipeline_mode = #tpu.pipeline_mode<synchronous>, transform_indices = @transform_0, window_bounds = array<i64: 16, 128>}, {transform_indices = @transform_1, window_bounds = array<i64: 128, 128>}, {transform_indices = @transform_2, window_bounds = array<i64: 1, 128>}, {transform_indices = @transform_3, window_bounds = array<i64: 1, 128>}, {transform_indices = @transform_4, window_bounds = array<i64: 16, 128>}]} {
    %c0 = arith.constant 0 : index
    %c0_0 = arith.constant 0 : index
    %0 = vector.load %arg1[%c0, %c0_0] : memref<16x128xf32, #tpu.memory_space<vmem>>, vector<16x128xf32>
    %1 = arith.truncf %0 : vector<16x128xf32> to vector<16x128xbf16>
    %c0_1 = arith.constant 0 : index
    %c0_2 = arith.constant 0 : index
    %2 = vector.load %arg2[%c0_1, %c0_2] : memref<128x128xbf16, #tpu.memory_space<vmem>>, vector<128x128xbf16>
    %cst = arith.constant dense<0.000000e+00> : vector<16x128xf32>
    %3 = tpu.matmul %1, %2, %cst {dimension_numbers = #tpu.dot_dimension_numbers<[1], [0], [0], [1], [0, 0, 1, 1], [], []>} : vector<16x128xbf16>, vector<128x128xbf16>, vector<16x128xf32> -> vector<16x128xf32>
    %c0_3 = arith.constant 0 : index
    %c0_4 = arith.constant 0 : index
    %4 = vector.load %arg3[%c0_3, %c0_4] : memref<1x128xf32, #tpu.memory_space<vmem>>, vector<1x128xf32>
    %c0_5 = arith.constant 0 : index
    %c0_6 = arith.constant 0 : index
    %5 = vector.load %arg4[%c0_5, %c0_6] : memref<1x128xf32, #tpu.memory_space<vmem>>, vector<1x128xf32>
    %6 = vector.extract_strided_slice %3 {offsets = [0, 0], sizes = [8, 128], strides = [1, 1]} : vector<16x128xf32> to vector<8x128xf32>
    %cst_7 = arith.constant dense<0.000000e+00> : vector<128xf32>
    %7 = vector.multi_reduction <add>, %6, %cst_7 [0] : vector<8x128xf32> to vector<128xf32>
    %8 = vector.shape_cast %7 : vector<128xf32> to vector<1x128xf32>
    %cst_8 = arith.constant 8.000000e+00 : f32
    %9 = vector.broadcast %cst_8 : f32 to vector<1x128xf32>
    %10 = arith.divf %8, %9 : vector<1x128xf32>
    %11 = vector.broadcast %10 : vector<1x128xf32> to vector<8x128xf32>
    %12 = arith.subf %6, %11 : vector<8x128xf32>
    %13 = arith.mulf %12, %12 : vector<8x128xf32>
    %cst_9 = arith.constant dense<0.000000e+00> : vector<128xf32>
    %14 = vector.multi_reduction <add>, %13, %cst_9 [0] : vector<8x128xf32> to vector<128xf32>
    %15 = vector.shape_cast %14 : vector<128xf32> to vector<1x128xf32>
    %cst_10 = arith.constant 8.000000e+00 : f32
    %16 = vector.broadcast %cst_10 : f32 to vector<1x128xf32>
    %17 = arith.divf %15, %16 : vector<1x128xf32>
    %18 = vector.broadcast %10 : vector<1x128xf32> to vector<8x128xf32>
    %19 = arith.subf %6, %18 : vector<8x128xf32>
    %cst_11 = arith.constant 9.99999974E-6 : f32
    %20 = vector.broadcast %cst_11 : f32 to vector<1x128xf32>
    %21 = arith.addf %17, %20 : vector<1x128xf32>
    %22 = math.rsqrt %21 : vector<1x128xf32>
    %23 = vector.broadcast %22 : vector<1x128xf32> to vector<8x128xf32>
    %24 = arith.mulf %19, %23 : vector<8x128xf32>
    %25 = vector.broadcast %4 : vector<1x128xf32> to vector<8x128xf32>
    %26 = arith.mulf %24, %25 : vector<8x128xf32>
    %27 = vector.broadcast %5 : vector<1x128xf32> to vector<8x128xf32>
    %28 = arith.addf %26, %27 : vector<8x128xf32>
    %cst_12 = arith.constant 0.000000e+00 : f32
    %29 = vector.broadcast %cst_12 : f32 to vector<8x128xf32>
    %30 = arith.maximumf %28, %29 : vector<8x128xf32>
    %31 = arith.truncf %30 : vector<8x128xf32> to vector<8x128xbf16>
    %c0_13 = arith.constant 0 : index
    %c0_14 = arith.constant 0 : index
    %32 = vector.load %arg5[%c0_13, %c0_14] : memref<16x128xbf16, #tpu.memory_space<vmem>>, vector<8x128xbf16>
    tpu.vector_store %arg5[%c0_13, %c0_14], %31 {strides = array<i32>} : memref<16x128xbf16, #tpu.memory_space<vmem>>, vector<8x128xbf16>,
    %33 = vector.extract_strided_slice %3 {offsets = [8, 0], sizes = [8, 128], strides = [1, 1]} : vector<16x128xf32> to vector<8x128xf32>
    %cst_15 = arith.constant dense<0.000000e+00> : vector<128xf32>
    %34 = vector.multi_reduction <add>, %33, %cst_15 [0] : vector<8x128xf32> to vector<128xf32>
    %35 = vector.shape_cast %34 : vector<128xf32> to vector<1x128xf32>
    %cst_16 = arith.constant 8.000000e+00 : f32
    %36 = vector.broadcast %cst_16 : f32 to vector<1x128xf32>
    %37 = arith.divf %35, %36 : vector<1x128xf32>
    %38 = vector.broadcast %37 : vector<1x128xf32> to vector<8x128xf32>
    %39 = arith.subf %33, %38 : vector<8x128xf32>
    %40 = arith.mulf %39, %39 : vector<8x128xf32>
    %cst_17 = arith.constant dense<0.000000e+00> : vector<128xf32>
    %41 = vector.multi_reduction <add>, %40, %cst_17 [0] : vector<8x128xf32> to vector<128xf32>
    %42 = vector.shape_cast %41 : vector<128xf32> to vector<1x128xf32>
    %cst_18 = arith.constant 8.000000e+00 : f32
    %43 = vector.broadcast %cst_18 : f32 to vector<1x128xf32>
    %44 = arith.divf %42, %43 : vector<1x128xf32>
    %45 = vector.broadcast %37 : vector<1x128xf32> to vector<8x128xf32>
    %46 = arith.subf %33, %45 : vector<8x128xf32>
    %cst_19 = arith.constant 9.99999974E-6 : f32
    %47 = vector.broadcast %cst_19 : f32 to vector<1x128xf32>
    %48 = arith.addf %44, %47 : vector<1x128xf32>
    %49 = math.rsqrt %48 : vector<1x128xf32>
    %50 = vector.broadcast %49 : vector<1x128xf32> to vector<8x128xf32>
    %51 = arith.mulf %46, %50 : vector<8x128xf32>
    %52 = vector.broadcast %4 : vector<1x128xf32> to vector<8x128xf32>
    %53 = arith.mulf %51, %52 : vector<8x128xf32>
    %54 = vector.broadcast %5 : vector<1x128xf32> to vector<8x128xf32>
    %55 = arith.addf %53, %54 : vector<8x128xf32>
    %cst_20 = arith.constant 0.000000e+00 : f32
    %56 = vector.broadcast %cst_20 : f32 to vector<8x128xf32>
    %57 = arith.maximumf %55, %56 : vector<8x128xf32>
    %58 = arith.truncf %57 : vector<8x128xf32> to vector<8x128xbf16>
    %c8 = arith.constant 8 : index
    %c0_21 = arith.constant 0 : index
    %59 = vector.load %arg5[%c8, %c0_21] : memref<16x128xbf16, #tpu.memory_space<vmem>>, vector<8x128xbf16>
    tpu.vector_store %arg5[%c8, %c0_21], %58 {strides = array<i32>} : memref<16x128xbf16, #tpu.memory_space<vmem>>, vector<8x128xbf16>,
    return
  }
  func.func @transform_0(%arg0: i32) -> (i32, i32) {
    %c0_i32 = arith.constant 0 : i32
    %c0_i32_0 = arith.constant 0 : i32
    %c0_i32_1 = arith.constant 0 : i32
    return %c0_i32, %c0_i32_0 : i32, i32
  }
  func.func @transform_1(%arg0: i32) -> (i32, i32) {
    %c0_i32 = arith.constant 0 : i32
    %c0_i32_0 = arith.constant 0 : i32
    return %c0_i32, %arg0 : i32, i32
  }
  func.func @transform_2(%arg0: i32) -> (i32, i32) {
    %c0_i32 = arith.constant 0 : i32
    %c0_i32_0 = arith.constant 0 : i32
    return %c0_i32, %arg0 : i32, i32
  }
  func.func @transform_3(%arg0: i32) -> (i32, i32) {
    %c0_i32 = arith.constant 0 : i32
    %c0_i32_0 = arith.constant 0 : i32
    return %c0_i32, %arg0 : i32, i32
  }
  func.func @transform_4(%arg0: i32) -> (i32, i32) {
    %c0_i32 = arith.constant 0 : i32
    %c0_i32_0 = arith.constant 0 : i32
    return %c0_i32, %arg0 : i32, i32
  }
}

module attributes {stable_mosaic.version = 11 : i64} {
  func.func @_linear_kernel(%arg0: i32, %arg1: memref<16x128xbf16, #tpu.memory_space<vmem>>, %arg2: memref<128x128xbf16, #tpu.memory_space<vmem>>, %arg3: memref<1x128xf32, #tpu.memory_space<vmem>>, %arg4: memref<16x128xf32, #tpu.memory_space<vmem>>) attributes {dimension_semantics = [#tpu.dimension_semantics<parallel>], iteration_bounds = array<i64: 1>, scalar_prefetch = 0 : i64, scratch_operands = 0 : i64, tpu.core_type = #tpu.core_type<tc>, window_params = [{pipeline_mode = #tpu.pipeline_mode<synchronous>, transform_indices = @transform_0, window_bounds = array<i64: 16, 128>}, {transform_indices = @transform_1, window_bounds = array<i64: 128, 128>}, {transform_indices = @transform_2, window_bounds = array<i64: 1, 128>}, {transform_indices = @transform_3, window_bounds = array<i64: 16, 128>}]} {
    %c0 = arith.constant 0 : index
    %c0_0 = arith.constant 0 : index
    %0 = vector.load %arg1[%c0, %c0_0] : memref<16x128xbf16, #tpu.memory_space<vmem>>, vector<16x128xbf16>
    %c0_1 = arith.constant 0 : index
    %c0_2 = arith.constant 0 : index
    %1 = vector.load %arg2[%c0_1, %c0_2] : memref<128x128xbf16, #tpu.memory_space<vmem>>, vector<128x128xbf16>
    %cst = arith.constant dense<0.000000e+00> : vector<16x128xf32>
    %2 = tpu.matmul %0, %1, %cst {dimension_numbers = #tpu.dot_dimension_numbers<[1], [0], [0], [1], [0, 0, 1, 1], [], []>} : vector<16x128xbf16>, vector<128x128xbf16>, vector<16x128xf32> -> vector<16x128xf32>
    %c0_3 = arith.constant 0 : index
    %c0_4 = arith.constant 0 : index
    %3 = vector.load %arg3[%c0_3, %c0_4] : memref<1x128xf32, #tpu.memory_space<vmem>>, vector<1x128xf32>
    %4 = vector.broadcast %3 : vector<1x128xf32> to vector<16x128xf32>
    %5 = arith.addf %2, %4 : vector<16x128xf32>
    %c0_5 = arith.constant 0 : index
    %c0_6 = arith.constant 0 : index
    %6 = vector.load %arg4[%c0_5, %c0_6] : memref<16x128xf32, #tpu.memory_space<vmem>>, vector<16x128xf32>
    tpu.vector_store %arg4[%c0_5, %c0_6], %5 {strides = array<i32>} : memref<16x128xf32, #tpu.memory_space<vmem>>, vector<16x128xf32>,
    return
  }
  func.func @transform_0(%arg0: i32) -> (i32, i32) {
    %c0_i32 = arith.constant 0 : i32
    %c0_i32_0 = arith.constant 0 : i32
    %c0_i32_1 = arith.constant 0 : i32
    return %c0_i32, %c0_i32_0 : i32, i32
  }
  func.func @transform_1(%arg0: i32) -> (i32, i32) {
    %c0_i32 = arith.constant 0 : i32
    %c0_i32_0 = arith.constant 0 : i32
    return %c0_i32, %arg0 : i32, i32
  }
  func.func @transform_2(%arg0: i32) -> (i32, i32) {
    %c0_i32 = arith.constant 0 : i32
    %c0_i32_0 = arith.constant 0 : i32
    return %c0_i32, %arg0 : i32, i32
  }
  func.func @transform_3(%arg0: i32) -> (i32, i32) {
    %c0_i32 = arith.constant 0 : i32
    %c0_i32_0 = arith.constant 0 : i32
    return %c0_i32, %arg0 : i32, i32
  }
}

</mosaic_0001>

<bundles_post_ra>
// kernel: plus_proj_forward.7
= control target key start
LH: loop header
LB: loop body
LE: loop exit
PB: predicated region body
PF: predicated region fallthrough
CT: control target
= control target key end

     0   :  { %v253_v0 = vmov 0.0   ;;  %vm254_vm0 = vmmov 0   ;;  %s319_s1 = inlined_call_operand.vmem [shape: bf16[128,128], index: 1, kind: input, shape index: {}]   ;;  %s320_s0 = inlined_call_operand.vmem [shape: bf16[16,128], index: 0, kind: input, shape index: {}]   ;;  %s321_s2 = inlined_call_operand.vmem [shape: f32[1,128], index: 2, kind: input, shape index: {}]   ;;  %s322_s3 = inlined_call_operand.vmem [shape: f32[1,128], index: 3, kind: input, shape index: {}]   ;;  %s323_s4 = inlined_call_operand.vmem [shape: bf16[16,128], index: 4, kind: output, shape index: {}]  }
   0x1   :  { %218 = vmatprep.subr.bf16.mxu0 %v253_v0  ;;  %v240_v1 = vld [vmem:[%s319_s1 + $0x38] sm:$0xff]   ;;  %234 = vmatprep.mubr.msk.bf16.mxu0 %vm254_vm0, %v253_v0  ;;  %v241_v2 = vld [vmem:[%s319_s1 + $0x30] sm:$0xff]   ;;  %v242_v3 = vld [vmem:[%s319_s1 + $0x28] sm:$0xff]  }
   0x2   :  { %219 = vmatpush3.bf16.msra.mxu0 %v240_v1  ;;  %v243_v4 = vld [vmem:[%s319_s1 + $0x20] sm:$0xff]   ;;  %v244_v5 = vld [vmem:[%s319_s1 + $0x18] sm:$0xff]   ;;  %v245_v6 = vld [vmem:[%s319_s1 + $0x10] sm:$0xff]  }
   0x3   :  { %220 = vmatprep.subr.bf16.mxu0 %v253_v0  ;;  %v246_v7 = vld [vmem:[%s319_s1 + $0x8] sm:$0xff]   ;;  %v247_v8 = vld [vmem:[%s319_s1] sm:$0xff]  }
   0x4   :  { %v248_v9 = vld [vmem:[%s320_s0] sm:$0xff]  }
   0x5   :  { %v207_v49 = vld [vmem:[%s321_s2] ss:$0 sm:$0xff] }
   0x6   :  { %221 = vmatpush3.bf16.msra.mxu0 %v241_v2  ;;  %v208_v51 = vld [vmem:[%s322_s3] ss:$0 sm:$0xff] }
   0x7   :  { %222 = vmatprep.subr.bf16.mxu0 %v253_v0 }
   0xa   :  { %223 = vmatpush3.bf16.msra.mxu0 %v242_v3 }
   0xb   :  { %224 = vmatprep.subr.bf16.mxu0 %v253_v0 }
   0xe   :  { %225 = vmatpush3.bf16.msra.mxu0 %v243_v4 }
   0xf   :  { %226 = vmatprep.subr.bf16.mxu0 %v253_v0 }
  0x12   :  { %227 = vmatpush3.bf16.msra.mxu0 %v244_v5 }
  0x13   :  { %228 = vmatprep.subr.bf16.mxu0 %v253_v0 }
  0x16   :  { %229 = vmatpush3.bf16.msra.mxu0 %v245_v6 }
  0x17   :  { %230 = vmatprep.subr.bf16.mxu0 %v253_v0 }
  0x1a   :  { %231 = vmatpush3.bf16.msra.mxu0 %v246_v7 }
  0x1b   :  { %232 = vmatprep.subr.bf16.mxu0 %v253_v0 }
  0x1e   :  { %233 = vmatpush3.bf16.msra.mxu0 %v247_v8 }
  0x21   :  { %235 = vmatmul.mubr.bf16.vlgmr.msra.gmra.mxu0 %v248_v9 }
  0xe1   :  { %v124_v10 = vpop.f32.mrf.mxu0 }
  0xe2   :  { %v133_v11 = vrot.slane %v124_v10, 4 }
  0xe3   :  { %v236_v12 = vpop.f32.mrf.mxu0 }
  0xe4   :  { %v134_v13 = vadd.f32 %v133_v11, %v124_v10 }
  0xe5   :  { %v127_v14 = vpop.f32.mrf.mxu0 }
  0xe6   :  { %v135_v15 = vrot.slane %v134_v13, 2  ;;  %v170_v16 = vrot.slane %v127_v14, 4 }
  0xe7   :  { %v237_v17 = vpop.f32.mrf.mxu0 }
  0xe8   :  { %v136_v18 = vadd.f32 %v135_v15, %v134_v13  ;;  %v171_v19 = vadd.f32 %v170_v16, %v127_v14 }
  0xea   :  { %v137_v20 = vrot.slane %v136_v18, 1  ;;  %v172_v21 = vrot.slane %v171_v19, 2 }
  0xec   :  { %v138_v22 = vadd.f32 %v137_v20, %v136_v18  ;;  %v173_v23 = vadd.f32 %v172_v21, %v171_v19 }
  0xee   :  { %v140_v24 = vmul.f32 0.125, %v138_v22  ;;  %v174_v25 = vrot.slane %v173_v23, 1 }
  0xf0   :  { %v141_v26 = vsub.f32 %v124_v10, %v140_v24  ;;  %v175_v27 = vadd.f32 %v174_v25, %v173_v23 }
  0xf2   :  { %v142_v28 = vmul.f32 %v141_v26, %v141_v26  ;;  %v176_v29 = vmul.f32 0.125, %v175_v27 }
  0xf4   :  { %v143_v30 = vrot.slane %v142_v28, 4  ;;  %v177_v31 = vsub.f32 %v127_v14, %v176_v29 }
  0xf6   :  { %v144_v32 = vadd.f32 %v143_v30, %v142_v28  ;;  %v178_v33 = vmul.f32 %v177_v31, %v177_v31 }
  0xf8   :  { %v145_v34 = vrot.slane %v144_v32, 2  ;;  %v179_v35 = vrot.slane %v178_v33, 4 }
  0xfa   :  { %v146_v36 = vadd.f32 %v145_v34, %v144_v32  ;;  %v180_v37 = vadd.f32 %v179_v35, %v178_v33 }
  0xfc   :  { %v147_v38 = vrot.slane %v146_v36, 1  ;;  %v181_v39 = vrot.slane %v180_v37, 2 }
  0xfe   :  { %v148_v40 = vadd.f32 %v147_v38, %v146_v36  ;;  %v182_v41 = vadd.f32 %v181_v39, %v180_v37 }
 0x100   :  { %v149_v42 = vmul.f32 0.125, %v148_v40  ;;  %v183_v43 = vrot.slane %v182_v41, 1 }
 0x102   :  { %v150_v44 = vadd.f32 1e-05, %v149_v42  ;;  %v184_v45 = vadd.f32 %v183_v43, %v182_v41 }
 0x104   :  { %249 = vrsqrt.f32 %v150_v44  ;;  %v185_v46 = vmul.f32 0.125, %v184_v45 }
 0x106   :  { %v186_v47 = vadd.f32 1e-05, %v185_v46 }
 0x108   :  { %251 = vrsqrt.f32 %v186_v47 }
 0x111   :  { %v250_v48 = vpop.eup %249 }
 0x112   :  { %v152_v50 = vmul.f32 %v250_v48, %v141_v26 }
 0x114   :  { %v159_v52 = vmul.f32 %v207_v49, %v152_v50 }
 0x115   :  { %v252_v53 = vpop.eup %251 }
 0x116   :  { %v166_v54 = vadd.f32 %v208_v51, %v159_v52  ;;  %v188_v55 = vmul.f32 %v252_v53, %v177_v31 }
 0x118   :  { %v167_v56 = vmax.f32 %v166_v54, 0.0  ;;  %v189_v57 = vmul.f32 %v207_v49, %v188_v55 }
 0x11a   :  { %v168_v58 = vpack.c.bf16 %v167_v56, %v167_v56  ;;  %v190_v59 = vadd.f32 %v208_v51, %v189_v57 }
 0x11c   :  { %169 = vst [vmem:[%s323_s4] sm:$0xf] %v168_v58  ;;  %v191_v60 = vmax.f32 %v190_v59, 0.0 }
 0x11e   :  { %v192_v61 = vpack.c.bf16 %v191_v60, %v191_v60 }
 0x120   :  { %193 = vst [vmem:[%s323_s4 + $0x4] sm:$0xf] %v192_v61 }

// kernel: plus_proj_forward.9
= control target key start
LH: loop header
LB: loop body
LE: loop exit
PB: predicated region body
PF: predicated region fallthrough
CT: control target
= control target key end

     0   :  { %v249_v0 = vmov 0.0   ;;  %vm250_vm0 = vmmov 0   ;;  %s315_s1 = inlined_call_operand.vmem [shape: bf16[128,128], index: 1, kind: input, shape index: {}]   ;;  %s316_s0 = inlined_call_operand.vmem [shape: bf16[16,128], index: 0, kind: input, shape index: {}]   ;;  %s317_s2 = inlined_call_operand.vmem [shape: f32[1,128], index: 2, kind: input, shape index: {}]   ;;  %s318_s3 = inlined_call_operand.vmem [shape: f32[1,128], index: 3, kind: input, shape index: {}]   ;;  %s319_s4 = inlined_call_operand.vmem [shape: f32[16,128], index: 4, kind: output, shape index: {}]  }
   0x1   :  { %214 = vmatprep.subr.bf16.mxu0 %v249_v0  ;;  %v236_v1 = vld [vmem:[%s315_s1 + $0x38] sm:$0xff]   ;;  %230 = vmatprep.mubr.msk.bf16.mxu0 %vm250_vm0, %v249_v0  ;;  %v237_v2 = vld [vmem:[%s315_s1 + $0x30] sm:$0xff]   ;;  %v238_v3 = vld [vmem:[%s315_s1 + $0x28] sm:$0xff]  }
   0x2   :  { %215 = vmatpush3.bf16.msra.mxu0 %v236_v1  ;;  %v239_v4 = vld [vmem:[%s315_s1 + $0x20] sm:$0xff]   ;;  %v240_v5 = vld [vmem:[%s315_s1 + $0x18] sm:$0xff]   ;;  %v241_v6 = vld [vmem:[%s315_s1 + $0x10] sm:$0xff]  }
   0x3   :  { %216 = vmatprep.subr.bf16.mxu0 %v249_v0  ;;  %v242_v7 = vld [vmem:[%s315_s1 + $0x8] sm:$0xff]   ;;  %v243_v8 = vld [vmem:[%s315_s1] sm:$0xff]  }
   0x4   :  { %v244_v9 = vld [vmem:[%s316_s0] sm:$0xff]  }
   0x5   :  { %v203_v49 = vld [vmem:[%s317_s2] ss:$0 sm:$0xff] }
   0x6   :  { %217 = vmatpush3.bf16.msra.mxu0 %v237_v2  ;;  %v204_v51 = vld [vmem:[%s318_s3] ss:$0 sm:$0xff] }
   0x7   :  { %218 = vmatprep.subr.bf16.mxu0 %v249_v0 }
   0xa   :  { %219 = vmatpush3.bf16.msra.mxu0 %v238_v3 }
   0xb   :  { %220 = vmatprep.subr.bf16.mxu0 %v249_v0 }
   0xe   :  { %221 = vmatpush3.bf16.msra.mxu0 %v239_v4 }
   0xf   :  { %222 = vmatprep.subr.bf16.mxu0 %v249_v0 }
  0x12   :  { %223 = vmatpush3.bf16.msra.mxu0 %v240_v5 }
  0x13   :  { %224 = vmatprep.subr.bf16.mxu0 %v249_v0 }
  0x16   :  { %225 = vmatpush3.bf16.msra.mxu0 %v241_v6 }
  0x17   :  { %226 = vmatprep.subr.bf16.mxu0 %v249_v0 }
  0x1a   :  { %227 = vmatpush3.bf16.msra.mxu0 %v242_v7 }
  0x1b   :  { %228 = vmatprep.subr.bf16.mxu0 %v249_v0 }
  0x1e   :  { %229 = vmatpush3.bf16.msra.mxu0 %v243_v8 }
  0x21   :  { %231 = vmatmul.mubr.bf16.vlgmr.msra.gmra.mxu0 %v244_v9 }
  0xe1   :  { %v124_v10 = vpop.f32.mrf.mxu0 }
  0xe2   :  { %v133_v11 = vrot.slane %v124_v10, 4 }
  0xe3   :  { %v232_v12 = vpop.f32.mrf.mxu0 }
  0xe4   :  { %v134_v13 = vadd.f32 %v133_v11, %v124_v10 }
  0xe5   :  { %v127_v14 = vpop.f32.mrf.mxu0 }
  0xe6   :  { %v135_v15 = vrot.slane %v134_v13, 2  ;;  %v168_v16 = vrot.slane %v127_v14, 4 }
  0xe7   :  { %v233_v17 = vpop.f32.mrf.mxu0 }
  0xe8   :  { %v136_v18 = vadd.f32 %v135_v15, %v134_v13  ;;  %v169_v19 = vadd.f32 %v168_v16, %v127_v14 }
  0xea   :  { %v137_v20 = vrot.slane %v136_v18, 1  ;;  %v170_v21 = vrot.slane %v169_v19, 2 }
  0xec   :  { %v138_v22 = vadd.f32 %v137_v20, %v136_v18  ;;  %v171_v23 = vadd.f32 %v170_v21, %v169_v19 }
  0xee   :  { %v140_v24 = vmul.f32 0.125, %v138_v22  ;;  %v172_v25 = vrot.slane %v171_v23, 1 }
  0xf0   :  { %v141_v26 = vsub.f32 %v124_v10, %v140_v24  ;;  %v173_v27 = vadd.f32 %v172_v25, %v171_v23 }
  0xf2   :  { %v142_v28 = vmul.f32 %v141_v26, %v141_v26  ;;  %v174_v29 = vmul.f32 0.125, %v173_v27 }
  0xf4   :  { %v143_v30 = vrot.slane %v142_v28, 4  ;;  %v175_v31 = vsub.f32 %v127_v14, %v174_v29 }
  0xf6   :  { %v144_v32 = vadd.f32 %v143_v30, %v142_v28  ;;  %v176_v33 = vmul.f32 %v175_v31, %v175_v31 }
  0xf8   :  { %v145_v34 = vrot.slane %v144_v32, 2  ;;  %v177_v35 = vrot.slane %v176_v33, 4 }
  0xfa   :  { %v146_v36 = vadd.f32 %v145_v34, %v144_v32  ;;  %v178_v37 = vadd.f32 %v177_v35, %v176_v33 }
  0xfc   :  { %v147_v38 = vrot.slane %v146_v36, 1  ;;  %v179_v39 = vrot.slane %v178_v37, 2 }
  0xfe   :  { %v148_v40 = vadd.f32 %v147_v38, %v146_v36  ;;  %v180_v41 = vadd.f32 %v179_v39, %v178_v37 }
 0x100   :  { %v149_v42 = vmul.f32 0.125, %v148_v40  ;;  %v181_v43 = vrot.slane %v180_v41, 1 }
 0x102   :  { %v150_v44 = vadd.f32 1e-05, %v149_v42  ;;  %v182_v45 = vadd.f32 %v181_v43, %v180_v41 }
 0x104   :  { %245 = vrsqrt.f32 %v150_v44  ;;  %v183_v46 = vmul.f32 0.125, %v182_v45 }
 0x106   :  { %v184_v47 = vadd.f32 1e-05, %v183_v46 }
 0x108   :  { %247 = vrsqrt.f32 %v184_v47 }
 0x111   :  { %v246_v48 = vpop.eup %245 }
 0x112   :  { %v152_v50 = vmul.f32 %v246_v48, %v141_v26 }
 0x114   :  { %v159_v52 = vmul.f32 %v203_v49, %v152_v50 }
 0x115   :  { %v248_v53 = vpop.eup %247 }
 0x116   :  { %v166_v54 = vadd.f32 %v204_v51, %v159_v52  ;;  %v186_v55 = vmul.f32 %v248_v53, %v175_v31 }
 0x118   :  { %167 = vst [vmem:[%s319_s4] sm:$0xff] %v166_v54  ;;  %v187_v56 = vmul.f32 %v203_v49, %v186_v55 }
 0x11a   :  { %v188_v57 = vadd.f32 %v204_v51, %v187_v56 }
 0x11c   :  { %189 = vst [vmem:[%s319_s4 + $0x8] sm:$0xff] %v188_v57 }

// kernel: plus_proj_forward.10
= control target key start
LH: loop header
LB: loop body
LE: loop exit
PB: predicated region body
PF: predicated region fallthrough
CT: control target
= control target key end

     0   :  { %v246_v0 = vmov 0.0   ;;  %vm247_vm0 = vmmov 0   ;;  %s315_s1 = inlined_call_operand.vmem [shape: bf16[128,128], index: 1, kind: input, shape index: {}]   ;;  %s316_s0 = inlined_call_operand.vmem [shape: f32[16,128], index: 0, kind: input, shape index: {}]   ;;  %s317_s2 = inlined_call_operand.vmem [shape: f32[1,128], index: 2, kind: input, shape index: {}]   ;;  %s318_s3 = inlined_call_operand.vmem [shape: f32[1,128], index: 3, kind: input, shape index: {}]   ;;  %s319_s4 = inlined_call_operand.vmem [shape: bf16[16,128], index: 4, kind: output, shape index: {}]  }
   0x1   :  { %212 = vmatprep.subr.bf16.mxu0 %v246_v0  ;;  %v234_v1 = vld [vmem:[%s315_s1 + $0x38] sm:$0xff]   ;;  %228 = vmatprep.mubr.msk.bf16.mxu0 %vm247_vm0, %v246_v0  ;;  %v235_v2 = vld [vmem:[%s315_s1 + $0x30] sm:$0xff]   ;;  %v236_v3 = vld [vmem:[%s315_s1 + $0x28] sm:$0xff]  }
   0x2   :  { %213 = vmatpush3.bf16.msra.mxu0 %v234_v1  ;;  %v237_v4 = vld [vmem:[%s315_s1 + $0x20] sm:$0xff]   ;;  %v238_v5 = vld [vmem:[%s315_s1 + $0x18] sm:$0xff]   ;;  %v239_v6 = vld [vmem:[%s315_s1 + $0x10] sm:$0xff]  }
   0x3   :  { %214 = vmatprep.subr.bf16.mxu0 %v246_v0  ;;  %v240_v7 = vld [vmem:[%s315_s1 + $0x8] sm:$0xff]   ;;  %v241_v8 = vld [vmem:[%s315_s1] sm:$0xff]  }
   0x4   :  { %v18_v9 = vld [vmem:[%s316_s0] sm:$0xff]  ;;  %v19_v10 = vld [vmem:[%s316_s0 + $0x8] sm:$0xff] }
   0x5   :  { %v20_v11 = vpack.c.bf16 %v19_v10, %v18_v9  ;;  %v201_v51 = vld [vmem:[%s317_s2] ss:$0 sm:$0xff] }
   0x6   :  { %215 = vmatpush3.bf16.msra.mxu0 %v235_v2  ;;  %v202_v53 = vld [vmem:[%s318_s3] ss:$0 sm:$0xff] }
   0x7   :  { %216 = vmatprep.subr.bf16.mxu0 %v246_v0 }
   0xa   :  { %217 = vmatpush3.bf16.msra.mxu0 %v236_v3 }
   0xb   :  { %218 = vmatprep.subr.bf16.mxu0 %v246_v0 }
   0xe   :  { %219 = vmatpush3.bf16.msra.mxu0 %v237_v4 }
   0xf   :  { %220 = vmatprep.subr.bf16.mxu0 %v246_v0 }
  0x12   :  { %221 = vmatpush3.bf16.msra.mxu0 %v238_v5 }
  0x13   :  { %222 = vmatprep.subr.bf16.mxu0 %v246_v0 }
  0x16   :  { %223 = vmatpush3.bf16.msra.mxu0 %v239_v6 }
  0x17   :  { %224 = vmatprep.subr.bf16.mxu0 %v246_v0 }
  0x1a   :  { %225 = vmatpush3.bf16.msra.mxu0 %v240_v7 }
  0x1b   :  { %226 = vmatprep.subr.bf16.mxu0 %v246_v0 }
  0x1e   :  { %227 = vmatpush3.bf16.msra.mxu0 %v241_v8 }
  0x21   :  { %229 = vmatmul.mubr.bf16.vlgmr.msra.gmra.mxu0 %v20_v11 }
  0xe1   :  { %v119_v12 = vpop.f32.mrf.mxu0 }
  0xe2   :  { %v128_v13 = vrot.slane %v119_v12, 4 }
  0xe3   :  { %v230_v14 = vpop.f32.mrf.mxu0 }
  0xe4   :  { %v129_v15 = vadd.f32 %v128_v13, %v119_v12 }
  0xe5   :  { %v122_v16 = vpop.f32.mrf.mxu0 }
  0xe6   :  { %v130_v17 = vrot.slane %v129_v15, 2  ;;  %v165_v18 = vrot.slane %v122_v16, 4 }
  0xe7   :  { %v231_v19 = vpop.f32.mrf.mxu0 }
  0xe8   :  { %v131_v20 = vadd.f32 %v130_v17, %v129_v15  ;;  %v166_v21 = vadd.f32 %v165_v18, %v122_v16 }
  0xea   :  { %v132_v22 = vrot.slane %v131_v20, 1  ;;  %v167_v23 = vrot.slane %v166_v21, 2 }
  0xec   :  { %v133_v24 = vadd.f32 %v132_v22, %v131_v20  ;;  %v168_v25 = vadd.f32 %v167_v23, %v166_v21 }
  0xee   :  { %v135_v26 = vmul.f32 0.125, %v133_v24  ;;  %v169_v27 = vrot.slane %v168_v25, 1 }
  0xf0   :  { %v136_v28 = vsub.f32 %v119_v12, %v135_v26  ;;  %v170_v29 = vadd.f32 %v169_v27, %v168_v25 }
  0xf2   :  { %v137_v30 = vmul.f32 %v136_v28, %v136_v28  ;;  %v171_v31 = vmul.f32 0.125, %v170_v29 }
  0xf4   :  { %v138_v32 = vrot.slane %v137_v30, 4  ;;  %v172_v33 = vsub.f32 %v122_v16, %v171_v31 }
  0xf6   :  { %v139_v34 = vadd.f32 %v138_v32, %v137_v30  ;;  %v173_v35 = vmul.f32 %v172_v33, %v172_v33 }
  0xf8   :  { %v140_v36 = vrot.slane %v139_v34, 2  ;;  %v174_v37 = vrot.slane %v173_v35, 4 }
  0xfa   :  { %v141_v38 = vadd.f32 %v140_v36, %v139_v34  ;;  %v175_v39 = vadd.f32 %v174_v37, %v173_v35 }
  0xfc   :  { %v142_v40 = vrot.slane %v141_v38, 1  ;;  %v176_v41 = vrot.slane %v175_v39, 2 }
  0xfe   :  { %v143_v42 = vadd.f32 %v142_v40, %v141_v38  ;;  %v177_v43 = vadd.f32 %v176_v41, %v175_v39 }
 0x100   :  { %v144_v44 = vmul.f32 0.125, %v143_v42  ;;  %v178_v45 = vrot.slane %v177_v43, 1 }
 0x102   :  { %v145_v46 = vadd.f32 1e-05, %v144_v44  ;;  %v179_v47 = vadd.f32 %v178_v45, %v177_v43 }
 0x104   :  { %242 = vrsqrt.f32 %v145_v46  ;;  %v180_v48 = vmul.f32 0.125, %v179_v47 }
 0x106   :  { %v181_v49 = vadd.f32 1e-05, %v180_v48 }
 0x108   :  { %244 = vrsqrt.f32 %v181_v49 }
 0x111   :  { %v243_v50 = vpop.eup %242 }
 0x112   :  { %v147_v52 = vmul.f32 %v243_v50, %v136_v28 }
 0x114   :  { %v154_v54 = vmul.f32 %v201_v51, %v147_v52 }
 0x115   :  { %v245_v55 = vpop.eup %244 }
 0x116   :  { %v161_v56 = vadd.f32 %v202_v53, %v154_v54  ;;  %v183_v57 = vmul.f32 %v245_v55, %v172_v33 }
 0x118   :  { %v162_v58 = vmax.f32 %v161_v56, 0.0  ;;  %v184_v59 = vmul.f32 %v201_v51, %v183_v57 }
 0x11a   :  { %v163_v60 = vpack.c.bf16 %v162_v58, %v162_v58  ;;  %v185_v61 = vadd.f32 %v202_v53, %v184_v59 }
 0x11c   :  { %164 = vst [vmem:[%s319_s4] sm:$0xf] %v163_v60  ;;  %v186_v62 = vmax.f32 %v185_v61, 0.0 }
 0x11e   :  { %v187_v63 = vpack.c.bf16 %v186_v62, %v186_v62 }
 0x120   :  { %188 = vst [vmem:[%s319_s4 + $0x4] sm:$0xf] %v187_v63 }

// kernel: plus_proj_forward.6
= control target key start
LH: loop header
LB: loop body
LE: loop exit
PB: predicated region body
PF: predicated region fallthrough
CT: control target
= control target key end

     0   :  { %s1478_s9 = smov 0   ;;  %s1671_s0 = inlined_call_operand.vmem [shape: f32[2,8,8,128], index: 0, kind: input, shape index: {}]   ;;  %s1672_s1 = inlined_call_operand.vmem [shape: f32[8,8], index: 1, kind: input, shape index: {}]   ;;  %s1673_s2 = inlined_call_operand.vmem [shape: bf16[2,8,128], index: 2, kind: output, shape index: {}]  }
   0x1 LB: > { %s1244_s10 = sadd.s32 4294967295, %s1457_s9   ;;  %p1248_p0 = scmp.ge.s32.totalorder %s1457_s9, 1  ;;  %s1457_s9 = sphi %s1478_s9, %s12_s9  }
   0x2   : > { %p112_p1 = scmp.lt.s32.totalorder %s1457_s9, 3 }
   0x4   : > { %p113_p2 = pnand %p1248_p0, %p112_p1 }
   0x5   : > { %p133_p3 = scmp.lt.s32.totalorder (!%p113_p2), %s1244_s10, 1 }
   0x6   : > { %116 = sbr.rel (%p113_p2) target bundleno = 775 (0x307), region = 28 }
   0xb   : > { %v1459_v0 = vmov 0.0   ;;  %s1675_s10 = smov (!%p133_p3, %s1244_s10), 1  ;;  %vm1460_vm0 = vmmov 0   ;;  %v1461_v33 = vmov 1966171168   ;;  %v502_v35 = vlaneseq  ;;  %v495_v36 = vld [vmem:[%s1672_s1] sm:$0xff] }
   0xc   : > { %1311 = vmatprep.subr.bf16.mxu0 %v1459_v0  ;;  %1317 = vmatprep.subr.bf16.mxu1 %v1459_v0  ;;  %s1270_s11 = sshll.u32 %s1675_s10, 6  ;;  %v500_v34 = vunpack.c.l.s4 %v1461_v33  ;;  %vm496_vm1 = vcmp.gt.f32.partialorder %v495_v36, 0.0  ;;  %v1462_v40 = vmov 0   ;;  %vm611_vm8 = vcmask 64512   ;;  %s1251_s17 = sshll.u32 %s1675_s10, 2 }
   0xd   : > { %1313 = vmatprep.mubr.msk.bf16.mxu0 %vm1460_vm0, %v1459_v0  ;;  %1319 = vmatprep.mubr.msk.bf16.mxu1 %vm1460_vm0, %v1459_v0  ;;  %s1498_s14 = scalar_lea.vmem %s1671_s0, %s1270_s11  ;;  %v503_v38 = vshrl.u32 %v502_v35, 7  ;;  %v497_v41 = vsel %vm496_vm1, 1, %v1462_v40  ;;  %s141_s20 = scalar_lea.vmem %s1673_s2, %s1251_s17 }
   0xe   : > { %v143_v1 = vld [vmem:[%s1498_s14] sm:$0xff]  ;;  %v144_v2 = vld [vmem:[%s1498_s14 + $0x8] sm:$0xff]  ;;  %v145_v7 = vld [vmem:[%s1498_s14 + $0x10] sm:$0xff]  ;;  %v501_v37 = vunpack.c.0.s8 %v500_v34  ;;  %v498_v46 = vcombine.high %v497_v41, %v497_v41 }
   0xf   : > { %v1502_v3 = vpack.c.bf16 %v143_v1, %v143_v1  ;;  %v1504_v4 = vpack.c.bf16 %v144_v2, %v144_v2  ;;  %v151_v5 = vmul.f32 0.088388346, %v143_v1  ;;  %v152_v6 = vmul.f32 0.088388346, %v144_v2  ;;  %v146_v8 = vld [vmem:[%s1498_s14 + $0x18] sm:$0xff]  ;;  %v147_v15 = vld [vmem:[%s1498_s14 + $0x20] sm:$0xff] }
  0x10   : > { %v1512_v11 = vpack.c.bf16 %v145_v7, %v145_v7  ;;  %v1514_v12 = vpack.c.bf16 %v146_v8, %v146_v8  ;;  %v153_v13 = vmul.f32 0.088388346, %v145_v7  ;;  %v154_v14 = vmul.f32 0.088388346, %v146_v8  ;;  %v148_v16 = vld [vmem:[%s1498_s14 + $0x28] sm:$0xff]  ;;  %v149_v23 = vld [vmem:[%s1498_s14 + $0x30] sm:$0xff] }
  0x11   : > { %1312 = vmatpush3.bf16.xpose.msra.mxu0 %v1502_v3  ;;  %1318 = vmatpush3.bf16.xpose.msra.mxu1 %v1504_v4  ;;  %v159_v9 = vpack.c.bf16 %v151_v5, %v151_v5  ;;  %v160_v10 = vpack.c.bf16 %v152_v6, %v152_v6  ;;  %v1526_v19 = vpack.c.bf16 %v147_v15, %v147_v15  ;;  %v155_v21 = vmul.f32 0.088388346, %v147_v15  ;;  %v150_v24 = vld [vmem:[%s1498_s14 + $0x38] sm:$0xff] }
  0x12   : > { %1323 = vmatprep.subr.bf16.mxu0 %v1459_v0  ;;  %1329 = vmatprep.subr.bf16.mxu1 %v1459_v0  ;;  %v161_v17 = vpack.c.bf16 %v153_v13, %v153_v13  ;;  %v162_v18 = vpack.c.bf16 %v154_v14, %v154_v14  ;;  %v1528_v20 = vpack.c.bf16 %v148_v16, %v148_v16  ;;  %v156_v22 = vmul.f32 0.088388346, %v148_v16 }
  0x13   : > { %v163_v25 = vpack.c.bf16 %v155_v21, %v155_v21  ;;  %v1540_v27 = vpack.c.bf16 %v149_v23, %v149_v23  ;;  %v1542_v28 = vpack.c.bf16 %v150_v24, %v150_v24  ;;  %v157_v29 = vmul.f32 0.088388346, %v149_v23 }
  0x14   : > { %v164_v26 = vpack.c.bf16 %v156_v22, %v156_v22  ;;  %v158_v30 = vmul.f32 0.088388346, %v150_v24  ;;  %v504_v39 = vsub.s32 %v501_v37, %v503_v38  ;;  %v1560_v47 = vsub.s32 0, %v503_v38 }
  0x15   : > { %v165_v31 = vpack.c.bf16 %v157_v29, %v157_v29 }
  0x16   : > { %v166_v32 = vpack.c.bf16 %v158_v30, %v158_v30  ;;  %v505_v42 = vrot.slane %v497_v41, %v504_v39  ;;  %v512_v52 = vrot.slane %v498_v46, %v504_v39 }
  0x18   : > { %1314 = vmatmul.mubr.bf16.vlgmr.msra.gmra.mxu0 %v159_v9  ;;  %1320 = vmatmul.mubr.bf16.vlgmr.msra.gmra.mxu1 %v160_v10  ;;  %v513_v43 = vcombine.high %v505_v42, %v505_v42  ;;  %v521_v44 = vrot.slane %v505_v42, %v504_v39  ;;  %v514_v55 = vcombine.high %v512_v52, %v512_v52 }
  0x19   : > { %1324 = vmatpush3.bf16.xpose.msra.mxu0 %v1512_v11  ;;  %1330 = vmatpush3.bf16.xpose.msra.mxu1 %v1514_v12  ;;  %v528_v60 = vrot.slane %v512_v52, %v504_v39 }
  0x1a   : > { %1325 = vmatprep.mubr.msk.bf16.mxu0 %vm1460_vm0, %v1459_v0  ;;  %1331 = vmatprep.mubr.msk.bf16.mxu1 %vm1460_vm0, %v1459_v0  ;;  %v535_v45 = vrot.slane %v513_v43, %v504_v39  ;;  %vm547_vm2 = vcmp.ne.s32.totalorder %v521_v44, 0  ;;  %v543_v50 = vcombine.high %v521_v44, %v521_v44  ;;  %v542_v61 = vrot.slane %v514_v55, %v504_v39 }
  0x1b   : > { %1335 = vmatprep.subr.bf16.mxu0 %v1459_v0  ;;  %1341 = vmatprep.subr.bf16.mxu1 %v1459_v0  ;;  %v555_v48 = vsel %vm547_vm2, 1, %v1462_v40  ;;  %vm551_vm9 = vcmp.ne.s32.totalorder %v528_v60, 0  ;;  %v544_v21 = vcombine.high %v528_v60, %v528_v60 }
  0x1c   : > { %vm548_vm3 = vcmp.ne.s32.totalorder %v535_v45, 0  ;;  %v545_v51 = vcombine.high %v535_v45, %v535_v45  ;;  %v566_v53 = vrot.slane %v555_v48, %v1560_v47  ;;  %vm549_vm4 = vcmp.ne.s32.totalorder %v543_v50, 0 }
  0x1d   : > { %v556_v49 = vsel %vm548_vm3, 1, %v1462_v40  ;;  %v557_v56 = vsel %vm549_vm4, 1, %v1462_v40  ;;  %vm552_vm10 = vcmp.ne.s32.totalorder %v542_v61, 0  ;;  %v559_v15 = vsel %vm551_vm9, 1, %v1462_v40 }
  0x1e   : > { %v570_v54 = vrot.slane %v556_v49, %v1560_v47  ;;  %vm550_vm5 = vcmp.ne.s32.totalorder %v545_v51, 0  ;;  %vm595_vm6 = vcmp.eq.s32.totalorder %v566_v53, 1  ;;  %v574_v6 = vrot.slane %v557_v56, %v1560_v47 }
  0x1f   : > { %v558_v57 = vsel %vm550_vm5, 1, %v1462_v40  ;;  %v560_v16 = vsel %vm552_vm10, 1, %v1462_v40  ;;  %v546_v22 = vcombine.high %v542_v61, %v542_v61  ;;  %v582_v30 = vrot.slane %v559_v15, %v1560_v47 }
  0x20   : > { %1326 = vmatmul.mubr.bf16.vlgmr.msra.gmra.mxu0 %v161_v17  ;;  %1332 = vmatmul.mubr.bf16.vlgmr.msra.gmra.mxu1 %v162_v18  ;;  %vm596_vm7 = vcmp.eq.s32.totalorder %v570_v54, 1  ;;  %v578_v7 = vrot.slane %v558_v57, %v1560_v47  ;;  %vm597_vm11 = vcmp.eq.s32.totalorder %v574_v6, 1  ;;  %vm553_vm13 = vcmp.ne.s32.totalorder %v544_v21, 0 }
  0x21   : > { %1336 = vmatpush3.bf16.xpose.msra.mxu0 %v1526_v19  ;;  %1342 = vmatpush3.bf16.xpose.msra.mxu1 %v1528_v20  ;;  %vm554_vm14 = vcmp.ne.s32.totalorder %v546_v22, 0  ;;  %vm599_vm15 = vcmp.eq.s32.totalorder %v582_v30, 1  ;;  %v561_v37 = vsel %vm553_vm13, 1, %v1462_v40  ;;  %vm711_vm4 = vcmask 1043456  }
  0x22   : > { %1337 = vmatprep.mubr.msk.bf16.mxu0 %vm1460_vm0, %v1459_v0  ;;  %1343 = vmatprep.mubr.msk.bf16.mxu1 %vm1460_vm0, %v1459_v0  ;;  %vm598_vm12 = vcmp.eq.s32.totalorder %v578_v7, 1  ;;  %v562_v38 = vsel %vm554_vm14, 1, %v1462_v40  ;;  %v590_v49 = vrot.slane %v561_v37, %v1560_v47  ;;  %vm1176_vm5 = vcmask 1042434  }
  0x23   : > { %1347 = vmatprep.subr.bf16.mxu0 %v1459_v0  ;;  %1353 = vmatprep.subr.bf16.mxu1 %v1459_v0  ;;  %v594_v50 = vrot.slane %v562_v38, %v1560_v47  ;;  %vm1184_vm9 = vcmask 1046534   ;;  %vm1186_vm10 = vcmask 1047559  }
  0x24   : > { %vm601_vm2 = vcmp.eq.s32.totalorder %v590_v49, 1 }
  0x25   : > { %vm602_vm3 = vcmp.eq.s32.totalorder %v594_v50, 1 }
  0x28   : > { %1338 = vmatmul.mubr.bf16.vlgmr.msra.gmra.mxu0 %v163_v25  ;;  %1344 = vmatmul.mubr.bf16.vlgmr.msra.gmra.mxu1 %v164_v26 }
  0x29   : > { %1348 = vmatpush3.bf16.xpose.msra.mxu0 %v1540_v27  ;;  %1354 = vmatpush3.bf16.xpose.msra.mxu1 %v1542_v28 }
  0x2a   : > { %1349 = vmatprep.mubr.msk.bf16.mxu0 %vm1460_vm0, %v1459_v0  ;;  %1355 = vmatprep.mubr.msk.bf16.mxu1 %vm1460_vm0, %v1459_v0 }
  0x2b   : > { %1359 = vmatprep.subr.bf16.mxu0 %v1459_v0  ;;  %1365 = vmatprep.subr.bf16.mxu1 %v1459_v0 }
  0x30   : > { %1350 = vmatmul.mubr.bf16.vlgmr.msra.gmra.mxu0 %v165_v31  ;;  %1356 = vmatmul.mubr.bf16.vlgmr.msra.gmra.mxu1 %v166_v32  ;;  %v586_v31 = vrot.slane %v560_v16, %v1560_v47 }
  0x31   : > { %1361 = vmatprep.mubr.msk.bf16.mxu0 %vm1460_vm0, %v1459_v0  ;;  %1367 = vmatprep.mubr.msk.bf16.mxu1 %vm1460_vm0, %v1459_v0 }
  0x32   : > { %vm600_vm1 = vcmp.eq.s32.totalorder %v586_v31, 1 }
  0xd8   : > { %v209_v58 = vpop.f32.mrf.mxu0  ;;  %v249_v59 = vpop.f32.mrf.mxu1 }
  0xd9   : > { %v1568_v62 = vsel %vm595_vm6, %v209_v58, -1e+09  ;;  %v1570_v63 = vsel %vm596_vm7, %v249_v59, -1e+09  ;;  %vm1178_vm6 = vcmask 1043459   ;;  %vm1180_vm7 = vcmask 1044484  }
  0xda   : > { %v1315_v1 = vpop.f32.mrf.mxu0  ;;  %v1321_v2 = vpop.f32.mrf.mxu1  ;;  %v612_v5 = vsel %vm611_vm8, %v1568_v62, -inf  ;;  %v615_v10 = vsel %vm611_vm8, %v1570_v63, -inf }
  0xdb   : > { %613 = vmax.xlane.f32.xlu0 %v612_v5 }
  0xdc   : > { %v212_v8 = vpop.f32.mrf.mxu0  ;;  %v252_v9 = vpop.f32.mrf.mxu1 }
  0xde   : > { %v1316_v13 = vpop.f32.mrf.mxu0  ;;  %v1322_v14 = vpop.f32.mrf.mxu1 }
  0xdf   : > { %616 = vmax.xlane.f32.xlu0 %v615_v10 }
  0xe0   : > { %v289_v17 = vpop.f32.mrf.mxu0  ;;  %v329_v18 = vpop.f32.mrf.mxu1 }
  0xe1   : > { %v605_v23 = vsel %vm597_vm11, %v289_v17, -1e+09  ;;  %v1580_v24 = vsel %vm598_vm12, %v329_v18, -1e+09 }
  0xe2   : > { %v1327_v25 = vpop.f32.mrf.mxu0  ;;  %v1333_v26 = vpop.f32.mrf.mxu1  ;;  %v618_v29 = vsel %vm611_vm8, %v605_v23, -inf  ;;  %v621_v34 = vsel %vm611_vm8, %v1580_v24, -inf }
  0xe3   : > { %619 = vmax.xlane.f32.xlu1 %v618_v29 }
  0xe4   : > { %v292_v32 = vpop.f32.mrf.mxu0  ;;  %v332_v33 = vpop.f32.mrf.mxu1 }
  0xe6   : > { %v1328_v35 = vpop.f32.mrf.mxu0  ;;  %v1334_v36 = vpop.f32.mrf.mxu1 }
  0xe7   : > { %622 = vmax.xlane.f32.xlu1 %v621_v34 }
  0xe8   : > { %v369_v39 = vpop.f32.mrf.mxu0  ;;  %v409_v41 = vpop.f32.mrf.mxu1 }
  0xe9   : > { %v607_v42 = vsel %vm599_vm15, %v369_v39, -1e+09  ;;  %v608_v43 = vsel %vm600_vm1, %v409_v41, -1e+09 }
  0xea   : > { %v1339_v44 = vpop.f32.mrf.mxu0  ;;  %v1345_v45 = vpop.f32.mrf.mxu1  ;;  %v627_v46 = vsel %vm611_vm8, %v608_v43, -inf  ;;  %v624_v48 = vsel %vm611_vm8, %v607_v42, -inf }
  0xeb   : > { %628 = vmax.xlane.f32.xlu1 %v627_v46  ;;  %625 = vmax.xlane.f32.xlu0 %v624_v48 }
  0xec   : > { %v372_v51 = vpop.f32.mrf.mxu0  ;;  %v412_v52 = vpop.f32.mrf.mxu1 }
  0xed   : > { %v713_v51 = vsel %vm711_vm4, %v1502_v3, 0  ;;  %v759_v52 = vsel %vm711_vm4, %v1504_v4, 0 }
  0xee   : > { %v1340_v53 = vpop.f32.mrf.mxu0  ;;  %v1346_v40 = vpop.f32.mrf.mxu1  ;;  %1360 = vmatpush3.bf16.msra.mxu0 %v713_v51  ;;  %1366 = vmatpush3.bf16.msra.mxu1 %v759_v52 }
  0xef   : > { %1371 = vmatprep.subr.bf16.mxu0 %v1459_v0  ;;  %1377 = vmatprep.subr.bf16.mxu1 %v1459_v0 }
  0xf0   : > { %v449_v54 = vpop.f32.mrf.mxu0  ;;  %v489_v55 = vpop.f32.mrf.mxu1 }
  0xf1   : > { %v609_v56 = vsel %vm601_vm2, %v449_v54, -1e+09  ;;  %v610_v57 = vsel %vm602_vm3, %v489_v55, -1e+09 }
  0xf2   : > { %v1351_v58 = vpop.f32.mrf.mxu0  ;;  %v1357_v59 = vpop.f32.mrf.mxu1  ;;  %v633_v60 = vsel %vm611_vm8, %v610_v57, -inf  ;;  %v630_v61 = vsel %vm611_vm8, %v609_v56, -inf }
  0xf3   : > { %634 = vmax.xlane.f32.xlu1 %v633_v60  ;;  %631 = vmax.xlane.f32.xlu0 %v630_v61  ;;  %v805_v60 = vsel %vm711_vm4, %v1512_v11, 0 }
  0xf4   : > { %v452_v47 = vpop.f32.mrf.mxu0  ;;  %v492_v1 = vpop.f32.mrf.mxu1 }
  0xf6   : > { %v1352_v2 = vpop.f32.mrf.mxu0  ;;  %v1358_v5 = vpop.f32.mrf.mxu1 }
  0xf7   : > { %v851_v2 = vsel %vm711_vm4, %v1514_v12, 0 }
 0x164   : > { %v614_v6 = vpop.xlane.xlu0 %613 }
 0x165   : > { %v636_v7 = vsub.f32 %v1568_v62, %v614_v6 }
 0x167   : > { %v644_v8 = vmul.f32 1.442695, %v636_v7 }
 0x168   : > { %v617_v9 = vpop.xlane.xlu0 %616 }
 0x169   : > { %1419 = vpow2.f32 %v644_v8  ;;  %v637_v10 = vsub.f32 %v1570_v63, %v617_v9  ;;  %v897_v9 = vsel %vm711_vm4, %v1526_v19, 0 }
 0x16b   : > { %v646_v13 = vmul.f32 1.442695, %v637_v10 }
 0x16c   : > { %v620_v14 = vpop.xlane.xlu1 %619 }
 0x16d   : > { %1421 = vpow2.f32 %v646_v13  ;;  %v638_v15 = vsub.f32 %v605_v23, %v620_v14  ;;  %v943_v14 = vsel %vm711_vm4, %v1528_v20, 0  ;;  %v989_v20 = vsel %vm711_vm4, %v1540_v27, 0 }
 0x16f   : > { %v648_v16 = vmul.f32 1.442695, %v638_v15 }
 0x170   : > { %v623_v17 = vpop.xlane.xlu1 %622 }
 0x171   : > { %1423 = vpow2.f32 %v648_v16  ;;  %v639_v18 = vsub.f32 %v1580_v24, %v623_v17 }
 0x173   : > { %v650_v21 = vmul.f32 1.442695, %v639_v18 }
 0x174   : > { %v629_v22 = vpop.xlane.xlu1 %628  ;;  %v626_v25 = vpop.xlane.xlu0 %625 }
 0x175   : > { %1425 = vpow2.f32 %v650_v21  ;;  %v641_v26 = vsub.f32 %v608_v43, %v629_v22  ;;  %v640_v62 = vsub.f32 %v607_v42, %v626_v25  ;;  %v1035_v22 = vsel %vm711_vm4, %v1542_v28, 0 }
 0x176   : > { %v1420_v29 = vpop.eup %1419 }
 0x177   : > { %v654_v30 = vmul.f32 1.442695, %v641_v26  ;;  %v652_v31 = vmul.f32 1.442695, %v640_v62  ;;  %v660_v63 = vsel %vm611_vm8, %v1420_v29, 0.0 }
 0x178   : > { %661 = vadd.xlane.f32.xlu0 %v660_v63 }
 0x179   : > { %1427 = vpow2.f32 %v654_v30 }
 0x17a   : > { %v1422_v32 = vpop.eup %1421  ;;  %1429 = vpow2.f32 %v652_v31 }
 0x17b   : > { %v663_v23 = vsel %vm611_vm8, %v1422_v32, 0.0 }
 0x17c   : > { %664 = vadd.xlane.f32.xlu1 %v663_v23  ;;  %v635_v33 = vpop.xlane.xlu1 %634  ;;  %v632_v24 = vpop.xlane.xlu0 %631 }
 0x17d   : > { %v643_v34 = vsub.f32 %v610_v57, %v635_v33  ;;  %v642_v35 = vsub.f32 %v609_v56, %v632_v24 }
 0x17e   : > { %v1424_v36 = vpop.eup %1423 }
 0x17f   : > { %v658_v37 = vmul.f32 1.442695, %v643_v34  ;;  %v656_v38 = vmul.f32 1.442695, %v642_v35  ;;  %v666_v39 = vsel %vm611_vm8, %v1424_v36, 0.0 }
 0x180   : > { %667 = vadd.xlane.f32.xlu0 %v666_v39 }
 0x181   : > { %1431 = vpow2.f32 %v658_v37 }
 0x182   : > { %v1426_v41 = vpop.eup %1425  ;;  %1433 = vpow2.f32 %v656_v38 }
 0x183   : > { %v669_v42 = vsel %vm611_vm8, %v1426_v41, 0.0 }
 0x184   : > { %670 = vadd.xlane.f32.xlu1 %v669_v42 }
 0x186   : > { %v1602_v43 = vpop.eup %1427 }
 0x187   : > { %v1604_v44 = vpop.eup %1429  ;;  %v675_v45 = vsel %vm611_vm8, %v1602_v43, 0.0 }
 0x188   : > { %676 = vadd.xlane.f32.xlu1 %v675_v45  ;;  %v672_v46 = vsel %vm611_vm8, %v1604_v44, 0.0 }
 0x189   : > { %673 = vadd.xlane.f32.xlu0 %v672_v46 }
 0x18e   : > { %v1610_v48 = vpop.eup %1431 }
 0x18f   : > { %v1612_v49 = vpop.eup %1433  ;;  %v681_v50 = vsel %vm611_vm8, %v1610_v48, 0.0 }
 0x190   : > { %682 = vadd.xlane.f32.xlu1 %v681_v50  ;;  %v678_v53 = vsel %vm611_vm8, %v1612_v49, 0.0 }
 0x191   : > { %679 = vadd.xlane.f32.xlu0 %v678_v53 }
 0x201   : > { %v662_v40 = vpop.xlane.xlu0 %661 }
 0x202   : > { %1435 = vrcp.f32 %v662_v40 }
 0x205   : > { %v665_v54 = vpop.xlane.xlu1 %664 }
 0x206   : > { %1437 = vrcp.f32 %v665_v54 }
 0x209   : > { %v668_v55 = vpop.xlane.xlu0 %667 }
 0x20a   : > { %1439 = vrcp.f32 %v668_v55 }
 0x20d   : > { %v671_v3 = vpop.xlane.xlu1 %670 }
 0x20e   : > { %1441 = vrcp.f32 %v671_v3 }
 0x20f   : > { %v1436_v4 = vpop.eup %1435 }
 0x210   : > { %v692_v56 = vmul.f32 %v1436_v4, %v1420_v29 }
 0x211   : > { %v677_v57 = vpop.xlane.xlu1 %676 }
 0x212   : > { %1443 = vrcp.f32 %v677_v57  ;;  %v674_v58 = vpop.xlane.xlu0 %673  ;;  %v700_v59 = vpack.c.bf16 %v692_v56, %v692_v56 }
 0x213   : > { %v1438_v61 = vpop.eup %1437  ;;  %1445 = vrcp.f32 %v674_v58 }
 0x214   : > { %1362 = vmatmul.mubr.msk.bf16.vlgmr.msra.gmra.mxu0 %vm611_vm8, %v700_v59  ;;  %v693_v47 = vmul.f32 %v1438_v61, %v1422_v32 }
 0x215   : > { %1372 = vmatpush3.bf16.msra.mxu0 %v805_v60  ;;  %1373 = vmatprep.mubr.msk.bf16.mxu0 %vm1460_vm0, %v1459_v0 }
 0x216   : > { %v701_v1 = vpack.c.bf16 %v693_v47, %v693_v47  ;;  %1383 = vmatprep.subr.bf16.mxu0 %v1459_v0 }
 0x217   : > { %v1440_v5 = vpop.eup %1439 }
 0x218   : > { %1368 = vmatmul.mubr.msk.bf16.vlgmr.msra.gmra.mxu1 %vm611_vm8, %v701_v1  ;;  %v694_v6 = vmul.f32 %v1440_v5, %v1424_v36 }
 0x219   : > { %1378 = vmatpush3.bf16.msra.mxu1 %v851_v2  ;;  %v683_v11 = vpop.xlane.xlu1 %682  ;;  %1379 = vmatprep.mubr.msk.bf16.mxu1 %vm1460_vm0, %v1459_v0 }
 0x21a   : > { %1447 = vrcp.f32 %v683_v11  ;;  %v680_v7 = vpop.xlane.xlu0 %679  ;;  %v702_v8 = vpack.c.bf16 %v694_v6, %v694_v6  ;;  %1389 = vmatprep.subr.bf16.mxu1 %v1459_v0 }
 0x21b   : > { %v1442_v12 = vpop.eup %1441  ;;  %1449 = vrcp.f32 %v680_v7 }
 0x21c   : > { %1374 = vmatmul.mubr.msk.bf16.vlgmr.msra.gmra.mxu0 %vm611_vm8, %v702_v8  ;;  %v695_v10 = vmul.f32 %v1442_v12, %v1426_v41 }
 0x21d   : > { %1384 = vmatpush3.bf16.msra.mxu0 %v897_v9  ;;  %1385 = vmatprep.mubr.msk.bf16.mxu0 %vm1460_vm0, %v1459_v0 }
 0x21e   : > { %v703_v13 = vpack.c.bf16 %v695_v10, %v695_v10  ;;  %1395 = vmatprep.subr.bf16.mxu0 %v1459_v0 }
 0x21f   : > { %v1444_v15 = vpop.eup %1443 }
 0x220   : > { %v1446_v16 = vpop.eup %1445  ;;  %1380 = vmatmul.mubr.msk.bf16.vlgmr.msra.gmra.mxu1 %vm611_vm8, %v703_v13  ;;  %v697_v17 = vmul.f32 %v1444_v15, %v1602_v43 }
 0x221   : > { %1390 = vmatpush3.bf16.msra.mxu1 %v943_v14  ;;  %v696_v19 = vmul.f32 %v1446_v16, %v1604_v44  ;;  %1391 = vmatprep.mubr.msk.bf16.mxu1 %vm1460_vm0, %v1459_v0 }
 0x222   : > { %1401 = vmatprep.subr.bf16.mxu1 %v1459_v0  ;;  %v705_v21 = vpack.c.bf16 %v697_v17, %v697_v17 }
 0x223   : > { %v704_v18 = vpack.c.bf16 %v696_v19, %v696_v19 }
 0x225   : > { %1386 = vmatmul.mubr.msk.bf16.vlgmr.msra.gmra.mxu0 %vm611_vm8, %v704_v18 }
 0x226   : > { %1396 = vmatpush3.bf16.msra.mxu0 %v989_v20  ;;  %1397 = vmatprep.mubr.msk.bf16.mxu0 %vm1460_vm0, %v1459_v0 }
 0x227   : > { %v1448_v25 = vpop.eup %1447 }
 0x228   : > { %v1450_v26 = vpop.eup %1449  ;;  %1392 = vmatmul.mubr.msk.bf16.vlgmr.msra.gmra.mxu1 %vm611_vm8, %v705_v21  ;;  %v699_v27 = vmul.f32 %v1448_v25, %v1610_v48 }
 0x229   : > { %1402 = vmatpush3.bf16.msra.mxu1 %v1035_v22  ;;  %v698_v62 = vmul.f32 %v1450_v26, %v1612_v49  ;;  %1403 = vmatprep.mubr.msk.bf16.mxu1 %vm1460_vm0, %v1459_v0  ;;  %vm1174_vm0 = vcmask 1041409  }
 0x22a   : > { %v707_v30 = vpack.c.bf16 %v699_v27, %v699_v27 }
 0x22b   : > { %v706_v29 = vpack.c.bf16 %v698_v62, %v698_v62 }
 0x22d   : > { %1398 = vmatmul.mubr.msk.bf16.vlgmr.msra.gmra.mxu0 %vm611_vm8, %v706_v29 }
 0x230   : > { %1404 = vmatmul.mubr.msk.bf16.vlgmr.msra.gmra.mxu1 %vm611_vm8, %v707_v30  ;;  %vm1182_vm8 = vcmask 1045509  }
 0x2d4   : > { %v749_v28 = vpop.f32.mrf.mxu0 }
 0x2d5   : > { %v1077_v34 = vrot.slane %v749_v28, 4 }
 0x2d6   : > { %v1363_v31 = vpop.f32.mrf.mxu0 }
 0x2d7   : > { %v1078_v41 = vadd.f32 %v1077_v34, %v749_v28 }
 0x2d8   : > { %v752_v63 = vpop.f32.mrf.mxu0  ;;  %v795_v32 = vpop.f32.mrf.mxu1 }
 0x2d9   : > { %v1083_v23 = vrot.slane %v795_v32, 4  ;;  %v1079_v51 = vrot.slane %v1078_v41, 2 }
 0x2da   : > { %v1364_v33 = vpop.f32.mrf.mxu0  ;;  %v1369_v24 = vpop.f32.mrf.mxu1 }
 0x2db   : > { %v1084_v37 = vadd.f32 %v1083_v23, %v795_v32  ;;  %v1080_v57 = vadd.f32 %v1079_v51, %v1078_v41 }
 0x2dc   : > { %v798_v35 = vpop.f32.mrf.mxu1  ;;  %v841_v36 = vpop.f32.mrf.mxu0 }
 0x2dd   : > { %v1089_v0 = vrot.slane %v841_v36, 4  ;;  %v1085_v45 = vrot.slane %v1084_v37, 2  ;;  %v1081_v7 = vrot.slane %v1080_v57, 1 }
 0x2de   : > { %v1370_v38 = vpop.f32.mrf.mxu1  ;;  %v1375_v39 = vpop.f32.mrf.mxu0 }
 0x2df   : > { %v1090_v42 = vadd.f32 %v1089_v0, %v841_v36  ;;  %v1086_v40 = vadd.f32 %v1085_v45, %v1084_v37  ;;  %v1082_v21 = vadd.f32 %v1081_v7, %v1080_v57 }
 0x2e0   : > { %v844_v43 = vpop.f32.mrf.mxu0  ;;  %v887_v44 = vpop.f32.mrf.mxu1 }
 0x2e1   : > { %v1095_v46 = vrot.slane %v887_v44, 4  ;;  %v1091_v48 = vrot.slane %v1090_v42, 2  ;;  %v1087_v47 = vrot.slane %v1086_v40, 1  ;;  %v1126_v24 = vmul.f32 0.125, %v1082_v21 }
 0x2e2   : > { %v1376_v49 = vpop.f32.mrf.mxu0  ;;  %v1381_v50 = vpop.f32.mrf.mxu1 }
 0x2e3   : > { %v1096_v52 = vadd.f32 %v1095_v46, %v887_v44  ;;  %v1092_v3 = vadd.f32 %v1091_v48, %v1090_v42  ;;  %v1088_v14 = vadd.f32 %v1087_v47, %v1086_v40  ;;  %v1271_v48 = vpack.c.bf16 %v1126_v24, %v1126_v24 }
 0x2e4   : > { %v890_v53 = vpop.f32.mrf.mxu1 }
 0x2e5   : > { %v1097_v54 = vrot.slane %v1096_v52, 2  ;;  %v933_v55 = vpop.f32.mrf.mxu0  ;;  %v1093_v5 = vrot.slane %v1092_v3, 1  ;;  %v1127_v30 = vmul.f32 0.125, %v1088_v14 }
 0x2e6   : > { %v1101_v4 = vrot.slane %v933_v55, 4  ;;  %v1382_v56 = vpop.f32.mrf.mxu1 }
 0x2e7   : > { %v1098_v58 = vadd.f32 %v1097_v54, %v1096_v52  ;;  %v1387_v59 = vpop.f32.mrf.mxu0  ;;  %v1094_v19 = vadd.f32 %v1093_v5, %v1092_v3  ;;  %v1272_v41 = vpack.c.bf16 %v1127_v30, %v1127_v30 }
 0x2e8   : > { %v1102_v60 = vadd.f32 %v1101_v4, %v933_v55  ;;  %v979_v61 = vpop.f32.mrf.mxu1  ;;  %v1166_v4 = vunpack.c.l.b16 %v1271_v48 }
 0x2e9   : > { %v936_v1 = vpop.f32.mrf.mxu0  ;;  %v1107_v2 = vrot.slane %v979_v61, 4  ;;  %v1099_v8 = vrot.slane %v1098_v58, 1  ;;  %v1128_v32 = vmul.f32 0.125, %v1094_v19  ;;  %v1167_v53 = vunpack.c.l.b16 %v1272_v41 }
 0x2ea   : > { %v1103_v6 = vrot.slane %v1102_v60, 2  ;;  %v1393_v11 = vpop.f32.mrf.mxu1 }
 0x2eb   : > { %v1108_v9 = vadd.f32 %v1107_v2, %v979_v61  ;;  %v1388_v12 = vpop.f32.mrf.mxu0  ;;  %v1100_v22 = vadd.f32 %v1099_v8, %v1098_v58  ;;  %v1273_v44 = vpack.c.bf16 %v1128_v32, %v1128_v32 }
 0x2ec   : > { %v1104_v10 = vadd.f32 %v1103_v6, %v1102_v60  ;;  %v982_v13 = vpop.f32.mrf.mxu1  ;;  %v1175_v60 = vsel %vm1174_vm0, %v1167_v53, %v1166_v4 }
 0x2ed   : > { %v1109_v15 = vrot.slane %v1108_v9, 2  ;;  %v1025_v16 = vpop.f32.mrf.mxu0  ;;  %v1129_v34 = vmul.f32 0.125, %v1100_v22  ;;  %v1168_v55 = vunpack.c.l.b16 %v1273_v44 }
 0x2ee   : > { %v1105_v17 = vrot.slane %v1104_v10, 1  ;;  %v1113_v18 = vrot.slane %v1025_v16, 4  ;;  %v1394_v20 = vpop.f32.mrf.mxu1 }
 0x2ef   : > { %v1110_v25 = vadd.f32 %v1109_v15, %v1108_v9  ;;  %v1399_v26 = vpop.f32.mrf.mxu0  ;;  %v1274_v49 = vpack.c.bf16 %v1129_v34, %v1129_v34  ;;  %v1177_v1 = vsel %vm1176_vm5, %v1168_v55, %v1175_v60 }
 0x2f0   : > { %v1106_v62 = vadd.f32 %v1105_v17, %v1104_v10  ;;  %v1114_v27 = vadd.f32 %v1113_v18, %v1025_v16  ;;  %v1071_v29 = vpop.f32.mrf.mxu1 }
 0x2f1   : > { %v1111_v28 = vrot.slane %v1110_v25, 1  ;;  %v1028_v31 = vpop.f32.mrf.mxu0  ;;  %v1119_v63 = vrot.slane %v1071_v29, 4  ;;  %v1169_v56 = vunpack.c.l.b16 %v1274_v49 }
 0x2f2   : > { %v1115_v23 = vrot.slane %v1114_v27, 2  ;;  %v1405_v33 = vpop.f32.mrf.mxu1  ;;  %v1130_v0 = vmul.f32 0.125, %v1106_v62 }
 0x2f3   : > { %v1112_v35 = vadd.f32 %v1111_v28, %v1110_v25  ;;  %v1120_v36 = vadd.f32 %v1119_v63, %v1071_v29  ;;  %v1400_v37 = vpop.f32.mrf.mxu0  ;;  %v1179_v5 = vsel %vm1178_vm6, %v1169_v56, %v1177_v1 }
 0x2f4   : > { %v1116_v38 = vadd.f32 %v1115_v23, %v1114_v27  ;;  %v1074_v39 = vpop.f32.mrf.mxu1  ;;  %v1275_v51 = vpack.c.bf16 %v1130_v0, %v1130_v0 }
 0x2f5   : > { %v1131_v42 = vmul.f32 0.125, %v1112_v35  ;;  %v1121_v43 = vrot.slane %v1120_v36, 2 }
 0x2f6   : > { %v1117_v45 = vrot.slane %v1116_v38, 1  ;;  %v1406_v46 = vpop.f32.mrf.mxu1  ;;  %v1170_v58 = vunpack.c.l.b16 %v1275_v51 }
 0x2f7   : > { %v1122_v50 = vadd.f32 %v1121_v43, %v1120_v36  ;;  %v1276_v40 = vpack.c.bf16 %v1131_v42, %v1131_v42 }
 0x2f8   : > { %v1118_v52 = vadd.f32 %v1117_v45, %v1116_v38  ;;  %v1181_v11 = vsel %vm1180_vm7, %v1170_v58, %v1179_v5 }
 0x2f9   : > { %v1123_v54 = vrot.slane %v1122_v50, 1  ;;  %v1171_v61 = vunpack.c.l.b16 %v1276_v40 }
 0x2fa   : > { %v1132_v3 = vmul.f32 0.125, %v1118_v52 }
 0x2fb   : > { %v1124_v57 = vadd.f32 %v1123_v54, %v1122_v50  ;;  %v1183_v7 = vsel %vm1182_vm8, %v1171_v61, %v1181_v11 }
 0x2fc   : > { %v1277_v59 = vpack.c.bf16 %v1132_v3, %v1132_v3 }
 0x2fd   : > { %v1133_v47 = vmul.f32 0.125, %v1124_v57 }
 0x2fe   : > { %v1172_v2 = vunpack.c.l.b16 %v1277_v59 }
 0x2ff   : > { %v1278_v6 = vpack.c.bf16 %v1133_v47, %v1133_v47 }
 0x300   : > { %v1185_v9 = vsel %vm1184_vm9, %v1172_v2, %v1183_v7 }
 0x301   : > { %v1173_v8 = vunpack.c.l.b16 %v1278_v6 }
 0x303   : > { %v1187_v12 = vsel %vm1186_vm10, %v1173_v8, %v1185_v9 }
 0x304   : > { %v1188_v10 = vpack.c.b16 %v1187_v12, %v1187_v12 }
 0x306   : > { %1190 = vst [vmem:[%s141_s20] sm:$0xf] %v1188_v10 }
 0x307 PF: > { %s12_s9 = sadd.s32 1, %s1457_s9  }
 0x308   : > { %p9_p4 = scmp.ge.s32.totalorder %s12_s9, 4  }
 0x30a   :  { %11 = sbr.rel (!%p9_p4) target bundleno = 1 (0x1), region = 58 }

// kernel: plus_proj_forward.11
= control target key start
LH: loop header
LB: loop body
LE: loop exit
PB: predicated region body
PF: predicated region fallthrough
CT: control target
= control target key end

     0   :  { %v191_v0 = vmov 0.0   ;;  %vm192_vm0 = vmmov 0   ;;  %s249_s1 = inlined_call_operand.vmem [shape: bf16[128,128], index: 1, kind: input, shape index: {}]   ;;  %s250_s0 = inlined_call_operand.vmem [shape: bf16[16,128], index: 0, kind: input, shape index: {}]   ;;  %s251_s2 = inlined_call_operand.vmem [shape: f32[1,128], index: 2, kind: input, shape index: {}]   ;;  %s252_s3 = inlined_call_operand.vmem [shape: f32[16,128], index: 3, kind: output, shape index: {}]  }
   0x1   :  { %160 = vmatprep.subr.bf16.mxu0 %v191_v0  ;;  %v182_v1 = vld [vmem:[%s249_s1 + $0x38] sm:$0xff]   ;;  %176 = vmatprep.mubr.msk.bf16.mxu0 %vm192_vm0, %v191_v0  ;;  %v183_v2 = vld [vmem:[%s249_s1 + $0x30] sm:$0xff]   ;;  %v184_v3 = vld [vmem:[%s249_s1 + $0x28] sm:$0xff]  }
   0x2   :  { %161 = vmatpush3.bf16.msra.mxu0 %v182_v1  ;;  %v185_v4 = vld [vmem:[%s249_s1 + $0x20] sm:$0xff]   ;;  %v186_v5 = vld [vmem:[%s249_s1 + $0x18] sm:$0xff]   ;;  %v187_v6 = vld [vmem:[%s249_s1 + $0x10] sm:$0xff]  }
   0x3   :  { %162 = vmatprep.subr.bf16.mxu0 %v191_v0  ;;  %v188_v7 = vld [vmem:[%s249_s1 + $0x8] sm:$0xff]   ;;  %v189_v8 = vld [vmem:[%s249_s1] sm:$0xff]  }
   0x4   :  { %v190_v9 = vld [vmem:[%s250_s0] sm:$0xff]  }
   0x5   :  { %v141_v10 = vld [vmem:[%s251_s2] ss:$0 sm:$0xff] }
   0x6   :  { %163 = vmatpush3.bf16.msra.mxu0 %v183_v2 }
   0x7   :  { %164 = vmatprep.subr.bf16.mxu0 %v191_v0 }
   0xa   :  { %165 = vmatpush3.bf16.msra.mxu0 %v184_v3 }
   0xb   :  { %166 = vmatprep.subr.bf16.mxu0 %v191_v0 }
   0xe   :  { %167 = vmatpush3.bf16.msra.mxu0 %v185_v4 }
   0xf   :  { %168 = vmatprep.subr.bf16.mxu0 %v191_v0 }
  0x12   :  { %169 = vmatpush3.bf16.msra.mxu0 %v186_v5 }
  0x13   :  { %170 = vmatprep.subr.bf16.mxu0 %v191_v0 }
  0x16   :  { %171 = vmatpush3.bf16.msra.mxu0 %v187_v6 }
  0x17   :  { %172 = vmatprep.subr.bf16.mxu0 %v191_v0 }
  0x1a   :  { %173 = vmatpush3.bf16.msra.mxu0 %v188_v7 }
  0x1b   :  { %174 = vmatprep.subr.bf16.mxu0 %v191_v0 }
  0x1e   :  { %175 = vmatpush3.bf16.msra.mxu0 %v189_v8 }
  0x21   :  { %177 = vmatmul.mubr.bf16.vlgmr.msra.gmra.mxu0 %v190_v9 }
  0xe1   :  { %v128_v11 = vpop.f32.mrf.mxu0 }
  0xe2   :  { %v129_v12 = vadd.f32 %v141_v10, %v128_v11 }
  0xe3   :  { %v178_v13 = vpop.f32.mrf.mxu0 }
  0xe4   :  { %135 = vst [vmem:[%s252_s3] sm:$0xff] %v129_v12 }
  0xe5   :  { %v131_v14 = vpop.f32.mrf.mxu0 }
  0xe6   :  { %v132_v15 = vadd.f32 %v141_v10, %v131_v14 }
  0xe7   :  { %v179_v16 = vpop.f32.mrf.mxu0 }
  0xe8   :  { %136 = vst [vmem:[%s252_s3 + $0x8] sm:$0xff] %v132_v15 }

</bundles_post_ra>
